<compile_context>
chip_gen: v7x
topology: tpu7x:2x2x1
jax: 0.10.0
libtpu: 0.0.40
codegen_flags: <defaults>
</compile_context>

<pallas_src>
import jax
import jax.numpy as jnp
from jax.experimental import pallas as pl
from jax.experimental.pallas import tpu as pltpu

EPS = 1e-5      # nn.BatchNorm2d default
LANE = 128      # TPU lane width: channel padding target
PADL = 8        # sublane-aligned interior offset inside the padded scratch


# --------------------------------------------------------------------------- #
# kernel helpers                                                              #
# --------------------------------------------------------------------------- #
def _conv3x3_same(y, w_ref, pad_ref):
    """3x3 'same' conv of y:(1,H,W,C) against w_ref:(9*C,Co) as ONE matmul.

    pad_ref is a (1, H+2, PADL+W+8, C) VMEM scratch used to stage the
    zero-padded activation with the interior at a sublane-aligned offset, so
    only the 1-pixel halo is zeroed and the interior store is unmasked.
    Returns the f32 accumulator of shape (H*W, Co).
    """
    _, H, W, C = y.shape
    Hp = pad_ref.shape[1]
    Wp = pad_ref.shape[2]
    dt = pad_ref.dtype

    # zero only the halo (aligned 8-wide column blocks / single rows)
    pad_ref[:, 0:1, :, :] = jnp.zeros((1, 1, Wp, C), dt)
    pad_ref[:, H + 1:H + 2, :, :] = jnp.zeros((1, 1, Wp, C), dt)
    pad_ref[:, :, 0:PADL, :] = jnp.zeros((1, Hp, PADL, C), dt)
    pad_ref[:, :, PADL + W:Wp, :] = jnp.zeros((1, Hp, Wp - PADL - W, C), dt)
    # sublane-aligned, unmasked interior store
    pad_ref[:, 1:H + 1, PADL:PADL + W, :] = y.astype(dt)

    # im2col: 9 shifted views concatenated along the lane (channel) axis,
    # then a single MXU matmul with K = 9*C, N = Co.
    cols = [
        pad_ref[:, dh:dh + H, PADL - 1 + dw:PADL - 1 + dw + W, :].reshape(H * W, C)
        for dh in range(3) for dw in range(3)
    ]
    patches = jnp.concatenate(cols, axis=-1)                       # (H*W, 9*C)
    return jnp.dot(patches, w_ref[...],
                   preferred_element_type=jnp.float32)             # (H*W, Co) f32


def _store_out_and_stats(acc, out_ref, stats_ref):
    """Write conv output + per-tile per-channel sum / sum-of-squares (f32)."""
    _, H, W, Co = out_ref.shape
    out_ref[...] = acc.reshape(1, H, W, Co).astype(out_ref.dtype)
    s = jnp.sum(acc, axis=0, keepdims=True)                        # (1, Co)
    ss = jnp.sum(acc * acc, axis=0, keepdims=True)                 # (1, Co)
    stats_ref[...] = jnp.concatenate([s, ss], axis=0).reshape(1, 2, Co)


# --------------------------------------------------------------------------- #
# kernels                                                                     #
# --------------------------------------------------------------------------- #
def conv_stats_kernel(x_ref, w_ref, h_ref, stats_ref, pad_ref):
    """Pass 1: conv1 (im2col matmul) + BN1 partial statistics."""
    acc = _conv3x3_same(x_ref[...], w_ref, pad_ref)
    _store_out_and_stats(acc, h_ref, stats_ref)


def bn_relu_conv_stats_kernel(h_ref, scale_ref, shift_ref, w_ref,
                              o_ref, stats_ref, pad_ref):
    """Pass 2: BN1 + ReLU (f32) fused with conv2 + BN2 partial statistics."""
    _, H, W, C = h_ref.shape
    scale = scale_ref[...].reshape(1, 1, 1, C)
    shift = shift_ref[...].reshape(1, 1, 1, C)
    y = jnp.maximum(h_ref[...].astype(jnp.float32) * scale + shift, 0.0)
    acc = _conv3x3_same(y, w_ref, pad_ref)
    _store_out_and_stats(acc, o_ref, stats_ref)


def bn_relu_kernel(h_ref, scale_ref, shift_ref, o_ref):
    """Pass 3: final BN2 + ReLU (lane-dense elementwise)."""
    _, H, W, C = h_ref.shape
    scale = scale_ref[...].reshape(1, 1, 1, C)
    shift = shift_ref[...].reshape(1, 1, 1, C)
    o_ref[...] = jnp.maximum(
        h_ref[...].astype(jnp.float32) * scale + shift, 0.0).astype(o_ref.dtype)


# --------------------------------------------------------------------------- #
# host-side glue                                                              #
# --------------------------------------------------------------------------- #
def _round_up(x, m):
    return (x + m - 1) // m * m


def _pad_weight(w, ci_p, co_p, dtype):
    """HWIO (3,3,ci,co) -> zero-padded, im2col-ordered (9*ci_p, co_p)."""
    kh, kw, ci, co = w.shape
    wp = jnp.zeros((kh, kw, ci_p, co_p), dtype)
    wp = wp.at[:, :, :ci, :co].set(w.astype(dtype))
    return wp.reshape(kh * kw * ci_p, co_p)


def _pad_vec(v, c_p):
    return jnp.zeros((c_p,), jnp.float32).at[: v.shape[0]].set(v.astype(jnp.float32))


def _bn_scale_shift(stats, count, gamma_p, beta_p):
    """Reduce per-tile (sum, sumsq) -> per-channel scale/shift (f32, tiny)."""
    s = jnp.sum(stats[:, 0, :], axis=0)
    ss = jnp.sum(stats[:, 1, :], axis=0)
    mean = s / count
    var = jnp.maximum(ss / count - mean * mean, 0.0)   # biased var (training BN)
    scale = gamma_p * jax.lax.rsqrt(var + EPS)
    shift = beta_p - mean * scale
    return scale.reshape(1, -1), shift.reshape(1, -1)


def double_conv(x_nchw, w1, g1, b1, w2, g2, b2, *, compute_dtype=jnp.bfloat16):
    """x_nchw: (N,Cin,H,W); w1: (3,3,Cin,C1) HWIO; w2: (3,3,C1,C2) HWIO."""
    N, Cin, H, W = x_nchw.shape
    C1 = w1.shape[-1]
    C2 = w2.shape[-1]
    Cip = _round_up(Cin, LANE)
    C1p = _round_up(C1, LANE)
    C2p = _round_up(C2, LANE)
    Wp = PADL + W + 8                      # padded-scratch width (8-aligned halo)
    count = float(N * H * W)
    bytes_per = jnp.dtype(compute_dtype).itemsize

    # NCHW -> NHWC + channel pad (single XLA layout copy; no spatial pre-pad).
    x = jnp.transpose(x_nchw, (0, 2, 3, 1)).astype(compute_dtype)
    x = jnp.pad(x, ((0, 0), (0, 0), (0, 0), (0, Cip - Cin)))

    w1p = _pad_weight(w1, Cip, C1p, compute_dtype)     # (9*Cip, C1p)
    w2p = _pad_weight(w2, C1p, C2p, compute_dtype)     # (9*C1p, C2p)
    g1p, b1p = _pad_vec(g1, C1p), _pad_vec(b1, C1p)
    g2p, b2p = _pad_vec(g2, C2p), _pad_vec(b2, C2p)

    cparams = pltpu.CompilerParams(
        dimension_semantics=("parallel",),             # megacore split on v7x
        vmem_limit_bytes=48 * 1024 * 1024,             # fits all of v5e/v6e/v7x
    )

    def img_spec(c):
        return pl.BlockSpec((1, H, W, c), lambda i: (i, 0, 0, 0))

    def full_spec(shape):
        nd = len(shape)
        return pl.BlockSpec(shape, lambda i: (0,) * nd)

    def stats_spec(c):
        return pl.BlockSpec((1, 2, c), lambda i: (i, 0, 0))

    # ---- pass 1: conv1 + per-image BN1 statistics --------------------------
    h1, st1 = pl.pallas_call(
        conv_stats_kernel,
        grid=(N,),
        in_specs=[img_spec(Cip), full_spec((9 * Cip, C1p))],
        out_specs=(img_spec(C1p), stats_spec(C1p)),
        out_shape=(jax.ShapeDtypeStruct((N, H, W, C1p), compute_dtype),
                   jax.ShapeDtypeStruct((N, 2, C1p), jnp.float32)),
        scratch_shapes=[pltpu.VMEM((1, H + 2, Wp, Cip), compute_dtype)],
        compiler_params=cparams,
        cost_estimate=pl.CostEstimate(
            flops=2 * N * H * W * 9 * Cip * C1p, transcendentals=0,
            bytes_accessed=(N * H * W * (Cip + C1p) + 9 * Cip * C1p) * bytes_per),
    )(x, w1p)
    scale1, shift1 = _bn_scale_shift(st1, count, g1p, b1p)

    # ---- pass 2: BN1 + ReLU + conv2 + per-image BN2 statistics -------------
    h2, st2 = pl.pallas_call(
        bn_relu_conv_stats_kernel,
        grid=(N,),
        in_specs=[img_spec(C1p), full_spec((1, C1p)), full_spec((1, C1p)),
                  full_spec((9 * C1p, C2p))],
        out_specs=(img_spec(C2p), stats_spec(C2p)),
        out_shape=(jax.ShapeDtypeStruct((N, H, W, C2p), compute_dtype),
                   jax.ShapeDtypeStruct((N, 2, C2p), jnp.float32)),
        scratch_shapes=[pltpu.VMEM((1, H + 2, Wp, C1p), compute_dtype)],
        compiler_params=cparams,
        cost_estimate=pl.CostEstimate(
            flops=2 * N * H * W * 9 * C1p * C2p, transcendentals=0,
            bytes_accessed=(N * H * W * (C1p + C2p) + 9 * C1p * C2p) * bytes_per),
    )(h1, scale1, shift1, w2p)
    scale2, shift2 = _bn_scale_shift(st2, count, g2p, b2p)

    # ---- pass 3: final BN2 + ReLU -------------------------------------------
    out = pl.pallas_call(
        bn_relu_kernel,
        grid=(N,),
        in_specs=[img_spec(C2p), full_spec((1, C2p)), full_spec((1, C2p))],
        out_specs=img_spec(C2p),
        out_shape=jax.ShapeDtypeStruct((N, H, W, C2p), jnp.float32),
        compiler_params=cparams,
        cost_estimate=pl.CostEstimate(
            flops=2 * N * H * W * C2p, transcendentals=0,
            bytes_accessed=N * H * W * C2p * (bytes_per + 4)),
    )(h2, scale2, shift2)

    return jnp.transpose(out[..., :C2], (0, 3, 1, 2))              # back to NCHW


# --------------------------------------------------------------------------- #
# pure-JAX reference (PyTorch DoubleConv in training mode)                    #
# --------------------------------------------------------------------------- #
def double_conv_reference(x_nchw, w1, g1, b1, w2, g2, b2):
    def conv(x, w):
        return jax.lax.conv_general_dilated(
            x, w, window_strides=(1, 1), padding=((1, 1), (1, 1)),
            dimension_numbers=("NHWC", "HWIO", "NHWC"))

    def bn_relu(x, g, b):
        m = jnp.mean(x, axis=(0, 1, 2), keepdims=True)
        v = jnp.mean((x - m) ** 2, axis=(0, 1, 2), keepdims=True)
        return jnp.maximum((x - m) * jax.lax.rsqrt(v + EPS) * g + b, 0.0)

    x = jnp.transpose(x_nchw, (0, 2, 3, 1)).astype(jnp.float32)
    h = bn_relu(conv(x, w1), g1, b1)
    y = bn_relu(conv(h, w2), g2, b2)
    return jnp.transpose(y, (0, 3, 1, 2))


if __name__ == "__main__":
    key = jax.random.PRNGKey(0)
    k_x, k_w1, k_w2 = jax.random.split(key, 3)

    N, Cin, Cout, H, W = 2, 4, 8, 16, 16

    x = jax.random.normal(k_x, (N, Cin, H, W), dtype=jnp.float32)
    # nn.Conv2d(in, out, 3, 1, 1, bias=False) weights — deterministic synthetic init (HWIO).
    w1 = 0.1 * jax.random.normal(k_w1, (3, 3, Cin, Cout), dtype=jnp.float32)
    w2 = 0.1 * jax.random.normal(k_w2, (3, 3, Cout, Cout), dtype=jnp.float32)
    # nn.BatchNorm2d default affine init: gamma=1, beta=0.
    g1 = jnp.ones((Cout,), jnp.float32)
    b1 = jnp.zeros((Cout,), jnp.float32)
    g2 = jnp.ones((Cout,), jnp.float32)
    b2 = jnp.zeros((Cout,), jnp.float32)

    ref = jax.block_until_ready(double_conv_reference(x, w1, g1, b1, w2, g2, b2))

    # f32 compute path: tight check of the kernel structure / BN semantics.
    out_f32 = jax.block_until_ready(
        double_conv(x, w1, g1, b1, w2, g2, b2, compute_dtype=jnp.float32))
    assert out_f32.shape == (N, Cout, H, W), out_f32.shape
    assert jnp.allclose(out_f32, ref, rtol=1e-3, atol=1e-3), \
        float(jnp.abs(out_f32 - ref).max())

    # default bf16-MXU path (f32 accumulation): looser tolerance sized for the
    # ~0.4%/layer bf16 operand-rounding error budget.
    out_bf16 = jax.block_until_ready(double_conv(x, w1, g1, b1, w2, g2, b2))
    assert out_bf16.shape == (N, Cout, H, W), out_bf16.shape
    assert jnp.allclose(out_bf16, ref, rtol=5e-2, atol=5e-2), \
        float(jnp.abs(out_bf16 - ref).max())

    print("KERNEL_OK")
</pallas_src>

<mosaic_0001>
module attributes {stable_mosaic.version = 11 : i64} {
  func.func @conv_stats_kernel(%arg0: i32, %arg1: memref<1x16x16x128xf32, #tpu.memory_space<vmem>>, %arg2: memref<1152x128xf32, #tpu.memory_space<vmem>>, %arg3: memref<1x16x16x128xf32, #tpu.memory_space<vmem>>, %arg4: memref<1x2x128xf32, #tpu.memory_space<vmem>>, %arg5: memref<1x18x32x128xf32, #tpu.memory_space<vmem>>) attributes {dimension_semantics = [#tpu.dimension_semantics<parallel>], iteration_bounds = array<i64: 2>, scalar_prefetch = 0 : i64, scratch_operands = 1 : i64, tpu.core_type = #tpu.core_type<tc>, window_params = [{transform_indices = @transform_0, window_bounds = array<i64: 1, 16, 16, 128>}, {pipeline_mode = #tpu.pipeline_mode<synchronous>, transform_indices = @transform_1, window_bounds = array<i64: 1152, 128>}, {transform_indices = @transform_2, window_bounds = array<i64: 1, 16, 16, 128>}, {transform_indices = @transform_3, window_bounds = array<i64: 1, 2, 128>}]} {
    %c0 = arith.constant 0 : index
    %c0_0 = arith.constant 0 : index
    %c0_1 = arith.constant 0 : index
    %c0_2 = arith.constant 0 : index
    %0 = vector.load %arg1[%c0, %c0_0, %c0_1, %c0_2] : memref<1x16x16x128xf32, #tpu.memory_space<vmem>>, vector<1x16x16x128xf32>
    %cst = arith.constant 0.000000e+00 : f32
    %1 = vector.broadcast %cst : f32 to vector<1x1x32x128xf32>
    %c0_3 = arith.constant 0 : index
    %c0_4 = arith.constant 0 : index
    %c0_5 = arith.constant 0 : index
    %c0_6 = arith.constant 0 : index
    %2 = vector.load %arg5[%c0_3, %c0_4, %c0_5, %c0_6] : memref<1x18x32x128xf32, #tpu.memory_space<vmem>>, vector<1x1x32x128xf32>
    tpu.vector_store %arg5[%c0_3, %c0_4, %c0_5, %c0_6], %1 {strides = array<i32>} : memref<1x18x32x128xf32, #tpu.memory_space<vmem>>, vector<1x1x32x128xf32>,
    %cst_7 = arith.constant 0.000000e+00 : f32
    %3 = vector.broadcast %cst_7 : f32 to vector<1x1x32x128xf32>
    %c0_8 = arith.constant 0 : index
    %c17 = arith.constant 17 : index
    %c0_9 = arith.constant 0 : index
    %c0_10 = arith.constant 0 : index
    %4 = vector.load %arg5[%c0_8, %c17, %c0_9, %c0_10] : memref<1x18x32x128xf32, #tpu.memory_space<vmem>>, vector<1x1x32x128xf32>
    tpu.vector_store %arg5[%c0_8, %c17, %c0_9, %c0_10], %3 {strides = array<i32>} : memref<1x18x32x128xf32, #tpu.memory_space<vmem>>, vector<1x1x32x128xf32>,
    %cst_11 = arith.constant 0.000000e+00 : f32
    %5 = vector.broadcast %cst_11 : f32 to vector<1x18x8x128xf32>
    %c0_12 = arith.constant 0 : index
    %c0_13 = arith.constant 0 : index
    %c0_14 = arith.constant 0 : index
    %c0_15 = arith.constant 0 : index
    %6 = vector.load %arg5[%c0_12, %c0_13, %c0_14, %c0_15] : memref<1x18x32x128xf32, #tpu.memory_space<vmem>>, vector<1x18x8x128xf32>
    tpu.vector_store %arg5[%c0_12, %c0_13, %c0_14, %c0_15], %5 {strides = array<i32>} : memref<1x18x32x128xf32, #tpu.memory_space<vmem>>, vector<1x18x8x128xf32>,
    %cst_16 = arith.constant 0.000000e+00 : f32
    %7 = vector.broadcast %cst_16 : f32 to vector<1x18x8x128xf32>
    %c0_17 = arith.constant 0 : index
    %c0_18 = arith.constant 0 : index
    %c24 = arith.constant 24 : index
    %c0_19 = arith.constant 0 : index
    %8 = vector.load %arg5[%c0_17, %c0_18, %c24, %c0_19] : memref<1x18x32x128xf32, #tpu.memory_space<vmem>>, vector<1x18x8x128xf32>
    tpu.vector_store %arg5[%c0_17, %c0_18, %c24, %c0_19], %7 {strides = array<i32>} : memref<1x18x32x128xf32, #tpu.memory_space<vmem>>, vector<1x18x8x128xf32>,
    %c0_20 = arith.constant 0 : index
    %c1 = arith.constant 1 : index
    %c8 = arith.constant 8 : index
    %c0_21 = arith.constant 0 : index
    %9 = vector.load %arg5[%c0_20, %c1, %c8, %c0_21] : memref<1x18x32x128xf32, #tpu.memory_space<vmem>>, vector<1x16x16x128xf32>
    tpu.vector_store %arg5[%c0_20, %c1, %c8, %c0_21], %0 {strides = array<i32>} : memref<1x18x32x128xf32, #tpu.memory_space<vmem>>, vector<1x16x16x128xf32>,
    %c0_22 = arith.constant 0 : index
    %c0_23 = arith.constant 0 : index
    %c7 = arith.constant 7 : index
    %c0_24 = arith.constant 0 : index
    %10 = vector.load %arg5[%c0_22, %c0_23, %c7, %c0_24] : memref<1x18x32x128xf32, #tpu.memory_space<vmem>>, vector<1x16x16x128xf32>
    %11 = vector.shape_cast %10 : vector<1x16x16x128xf32> to vector<256x128xf32>
    %c0_25 = arith.constant 0 : index
    %c0_26 = arith.constant 0 : index
    %c8_27 = arith.constant 8 : index
    %c0_28 = arith.constant 0 : index
    %12 = vector.load %arg5[%c0_25, %c0_26, %c8_27, %c0_28] : memref<1x18x32x128xf32, #tpu.memory_space<vmem>>, vector<1x16x16x128xf32>
    %13 = vector.shape_cast %12 : vector<1x16x16x128xf32> to vector<256x128xf32>
    %c0_29 = arith.constant 0 : index
    %c0_30 = arith.constant 0 : index
    %c9 = arith.constant 9 : index
    %c0_31 = arith.constant 0 : index
    %14 = vector.load %arg5[%c0_29, %c0_30, %c9, %c0_31] : memref<1x18x32x128xf32, #tpu.memory_space<vmem>>, vector<1x16x16x128xf32>
    %15 = vector.shape_cast %14 : vector<1x16x16x128xf32> to vector<256x128xf32>
    %c0_32 = arith.constant 0 : index
    %c1_33 = arith.constant 1 : index
    %c7_34 = arith.constant 7 : index
    %c0_35 = arith.constant 0 : index
    %16 = vector.load %arg5[%c0_32, %c1_33, %c7_34, %c0_35] : memref<1x18x32x128xf32, #tpu.memory_space<vmem>>, vector<1x16x16x128xf32>
    %17 = vector.shape_cast %16 : vector<1x16x16x128xf32> to vector<256x128xf32>
    %c0_36 = arith.constant 0 : index
    %c1_37 = arith.constant 1 : index
    %c8_38 = arith.constant 8 : index
    %c0_39 = arith.constant 0 : index
    %18 = vector.load %arg5[%c0_36, %c1_37, %c8_38, %c0_39] : memref<1x18x32x128xf32, #tpu.memory_space<vmem>>, vector<1x16x16x128xf32>
    %19 = vector.shape_cast %18 : vector<1x16x16x128xf32> to vector<256x128xf32>
    %c0_40 = arith.constant 0 : index
    %c1_41 = arith.constant 1 : index
    %c9_42 = arith.constant 9 : index
    %c0_43 = arith.constant 0 : index
    %20 = vector.load %arg5[%c0_40, %c1_41, %c9_42, %c0_43] : memref<1x18x32x128xf32, #tpu.memory_space<vmem>>, vector<1x16x16x128xf32>
    %21 = vector.shape_cast %20 : vector<1x16x16x128xf32> to vector<256x128xf32>
    %c0_44 = arith.constant 0 : index
    %c2 = arith.constant 2 : index
    %c7_45 = arith.constant 7 : index
    %c0_46 = arith.constant 0 : index
    %22 = vector.load %arg5[%c0_44, %c2, %c7_45, %c0_46] : memref<1x18x32x128xf32, #tpu.memory_space<vmem>>, vector<1x16x16x128xf32>
    %23 = vector.shape_cast %22 : vector<1x16x16x128xf32> to vector<256x128xf32>
    %c0_47 = arith.constant 0 : index
    %c2_48 = arith.constant 2 : index
    %c8_49 = arith.constant 8 : index
    %c0_50 = arith.constant 0 : index
    %24 = vector.load %arg5[%c0_47, %c2_48, %c8_49, %c0_50] : memref<1x18x32x128xf32, #tpu.memory_space<vmem>>, vector<1x16x16x128xf32>
    %25 = vector.shape_cast %24 : vector<1x16x16x128xf32> to vector<256x128xf32>
    %c0_51 = arith.constant 0 : index
    %c2_52 = arith.constant 2 : index
    %c9_53 = arith.constant 9 : index
    %c0_54 = arith.constant 0 : index
    %26 = vector.load %arg5[%c0_51, %c2_52, %c9_53, %c0_54] : memref<1x18x32x128xf32, #tpu.memory_space<vmem>>, vector<1x16x16x128xf32>
    %27 = vector.shape_cast %26 : vector<1x16x16x128xf32> to vector<256x128xf32>
    %28 = tpu.concatenate %11, %13, %15, %17, %19, %21, %23, %25, %27 in 1 : vector<256x128xf32>, vector<256x128xf32>, vector<256x128xf32>, vector<256x128xf32>, vector<256x128xf32>, vector<256x128xf32>, vector<256x128xf32>, vector<256x128xf32>, vector<256x128xf32> -> vector<256x1152xf32>
    %c0_55 = arith.constant 0 : index
    %c0_56 = arith.constant 0 : index
    %29 = vector.load %arg2[%c0_55, %c0_56] : memref<1152x128xf32, #tpu.memory_space<vmem>>, vector<1152x128xf32>
    %cst_57 = arith.constant dense<0.000000e+00> : vector<256x128xf32>
    %30 = tpu.matmul %28, %29, %cst_57 {dimension_numbers = #tpu.dot_dimension_numbers<[1], [0], [0], [1], [0, 0, 1, 1], [], []>} : vector<256x1152xf32>, vector<1152x128xf32>, vector<256x128xf32> -> vector<256x128xf32>
    %31 = vector.shape_cast %30 : vector<256x128xf32> to vector<1x16x16x128xf32>
    %c0_58 = arith.constant 0 : index
    %c0_59 = arith.constant 0 : index
    %c0_60 = arith.constant 0 : index
    %c0_61 = arith.constant 0 : index
    %32 = vector.load %arg3[%c0_58, %c0_59, %c0_60, %c0_61] : memref<1x16x16x128xf32, #tpu.memory_space<vmem>>, vector<1x16x16x128xf32>
    tpu.vector_store %arg3[%c0_58, %c0_59, %c0_60, %c0_61], %31 {strides = array<i32>} : memref<1x16x16x128xf32, #tpu.memory_space<vmem>>, vector<1x16x16x128xf32>,
    %cst_62 = arith.constant dense<0.000000e+00> : vector<128xf32>
    %33 = vector.multi_reduction <add>, %30, %cst_62 [0] : vector<256x128xf32> to vector<128xf32>
    %34 = vector.shape_cast %33 : vector<128xf32> to vector<1x128xf32>
    %35 = arith.mulf %30, %30 : vector<256x128xf32>
    %cst_63 = arith.constant dense<0.000000e+00> : vector<128xf32>
    %36 = vector.multi_reduction <add>, %35, %cst_63 [0] : vector<256x128xf32> to vector<128xf32>
    %37 = vector.shape_cast %36 : vector<128xf32> to vector<1x128xf32>
    %38 = tpu.concatenate %34, %37 in 0 : vector<1x128xf32>, vector<1x128xf32> -> vector<2x128xf32>
    %39 = vector.shape_cast %38 : vector<2x128xf32> to vector<1x2x128xf32>
    %c0_64 = arith.constant 0 : index
    %c0_65 = arith.constant 0 : index
    %c0_66 = arith.constant 0 : index
    %40 = vector.load %arg4[%c0_64, %c0_65, %c0_66] : memref<1x2x128xf32, #tpu.memory_space<vmem>>, vector<1x2x128xf32>
    tpu.vector_store %arg4[%c0_64, %c0_65, %c0_66], %39 {strides = array<i32>} : memref<1x2x128xf32, #tpu.memory_space<vmem>>, vector<1x2x128xf32>,
    return
  }
  func.func @transform_0(%arg0: i32) -> (i32, i32, i32, i32) {
    %c0_i32 = arith.constant 0 : i32
    %c0_i32_0 = arith.constant 0 : i32
    %c0_i32_1 = arith.constant 0 : i32
    %c0_i32_2 = arith.constant 0 : i32
    return %arg0, %c0_i32, %c0_i32_0, %c0_i32_1 : i32, i32, i32, i32
  }
  func.func @transform_1(%arg0: i32) -> (i32, i32) {
    %c0_i32 = arith.constant 0 : i32
    %c0_i32_0 = arith.constant 0 : i32
    %c0_i32_1 = arith.constant 0 : i32
    return %c0_i32, %c0_i32_0 : i32, i32
  }
  func.func @transform_2(%arg0: i32) -> (i32, i32, i32, i32) {
    %c0_i32 = arith.constant 0 : i32
    %c0_i32_0 = arith.constant 0 : i32
    %c0_i32_1 = arith.constant 0 : i32
    %c0_i32_2 = arith.constant 0 : i32
    return %arg0, %c0_i32, %c0_i32_0, %c0_i32_1 : i32, i32, i32, i32
  }
  func.func @transform_3(%arg0: i32) -> (i32, i32, i32) {
    %c0_i32 = arith.constant 0 : i32
    %c0_i32_0 = arith.constant 0 : i32
    %c0_i32_1 = arith.constant 0 : i32
    return %arg0, %c0_i32, %c0_i32_0 : i32, i32, i32
  }
}

</mosaic_0001>

<bundles_post_ra>
// kernel: tpu_custom_call.1
= control target key start
LH: loop header
LB: loop body
LE: loop exit
PB: predicated region body
PF: predicated region fallthrough
CT: control target
= control target key end

     0   :  { %9 = vsyncpa [#allocation4], 0  ;;  %s4249_s0 = inlined_call_operand.hbm [shape: f32[2,16,16,128], index: 0, kind: input, shape index: {}]   ;;  %s4250_s1 = inlined_call_operand.hbm [shape: f32[1152,128], index: 1, kind: input, shape index: {}]   ;;  %s4251_s2 = inlined_call_operand.hbm [shape: f32[2,16,16,128], index: 2, kind: output, shape index: {0}]   ;;  %s4252_s3 = inlined_call_operand.hbm [shape: f32[2,2,128], index: 3, kind: output, shape index: {1}]  }
   0x1   :  { %11 = vsyncpa [#allocation4 + $0x1], 0 }
   0x2   :  { %12 = vsyncpa [#allocation7], 0 }
   0x3   :  { %13 = vsyncpa [#allocation5], 0 }
   0x4   :  { %15 = vsyncpa [#allocation5 + $0x1], 0 }
   0x5   :  { %16 = vsyncpa [#allocation10], 0 }
   0x6   :  { %18 = vsyncpa [#allocation10 + $0x1], 0  ;;  %s3005_s12 = smov 0   ;;  %s3007_s13 = smov 0  }
   0x7   :  { %s3009_s14 = smov 0   ;;  %s3011_s15 = smov 0  }
   0x8 LB: > { %s3026_s16 = sadd.s32 4294967295, %s2973_s15   ;;  %s2171_s17 = sadd.s32 4294967294, %s2973_s15   ;;  %s2973_s15 = sphi %s3011_s15, %s4387_s15   ;;  %s2969_s14 = sphi %s3009_s14, %s4386_s14   ;;  %s2965_s13 = sphi %s3007_s13, %s4385_s13   ;;  %s2961_s12 = sphi %s3005_s12, %s4384_s12  }
   0x9   : > { %p44_p0 = scmp.ne.s32.totalorder %s2965_s13, %s2961_s12  ;;  %p4253_p1 = scmp.eq.s32.totalorder %s3026_s16, 0 }
   0xa   : > { %p95_p3 = scmp.eq.s32.totalorder %s2171_s17, 1  ;;  %p2172_p5 = scmp.ge.s32.totalorder %s2973_s15, 1 }
   0xb   : > { %p3035_p4 = por %p4253_p1, %p44_p0  ;;  %p128_p7 = scmp.lt.s32.totalorder %s2973_s15, 3 }
   0xc   : > { %p3040_p6 = por %p95_p3, %p44_p0  ;;  %s2975_s21 = smov [#allocation6]  }
   0xd   : > { %s4302_s18 = scalar_select %p3035_p4, 1, 0 }
   0xe   : > { %s4303_s19 = scalar_select %p3040_p6, 1, 0 }
   0xf   : > { %p3045_p8 = pnand %p2172_p5, %p128_p7  ;;  %s140_s22 = sshll.u32 %s2975_s21, 4  ;;  %s3049_s22 = int_to_ptr.vmem [resolvable:$true] %s140_s22 }
  0x10   : > { %s3061_s24 = sadd.s32 1, %s2973_s15   ;;  %s31_s25 = sadd.s32 1, %s2969_s14 }
  0x11   : > { %s4304_s20 = scalar_select %p3045_p8, 1, 0 }
  0x12   : > { %p2722_p9 = pneg %p3045_p8  ;;  %s28_s26 = ssub.s32 %s2973_s15, %s3061_s24 }
  0x13   : > { %s2813_s29 = scalar_lea.hbm %s4250_s1, 18432 }
  0x14   : > { %p3056_p11 = pnand %p2722_p9, %p4253_p1  ;;  %p2814_p12 = scmp.ne.s32.totalorder %s4250_s1, %s2813_s29 }
  0x15   : > { %p2820_p5 = scmp.lt.u32.totalorder %s2813_s29, %s4250_s1 }
  0x16   : > { %p2815_p13 = pneg %p3056_p11 }
  0x18   : > { %p2816_p0 = pnand %p2815_p13, %p2814_p12 }
  0x1a   : > { %p2817_p3 = pneg %p2816_p0 }
  0x1c   : > { %p2822_p7 = pnand %p2820_p5, %p2817_p3 }
  0x1e   : > { %2825 = shalt.err (!%p2822_p7)
}
  0x1f   : > { %s2826_s7 = scalar_lea.vmem %s3049_s22, 18432  ;;  %p2834_p2 = scmp.lt.s32.totalorder %s3049_s22, %s3049_s22 }
  0x20   : > { %p2827_p9 = scmp.ne.s32.totalorder %s3049_s22, %s2826_s7  ;;  %p2835_p6 = scmp.lt.s32.totalorder %s2826_s7, %s2826_s7 }
  0x22   : > { %p2829_p10 = pnand %p2827_p9, %p2815_p13  ;;  %p2836_p4 = por %p2835_p6, %p2834_p2 }
  0x24   : > { %p2830_p1 = pneg %p2829_p10 }
  0x26   : > { %p2837_p8 = pnand %p2836_p4, %p2830_p1 }
  0x28   : > { %2840 = shalt.err (!%p2837_p8)
}
  0x29   : > { %s2976_s8 = smov 128   ;;  %s2977_s9 = smov 8  }
  0x2a   : > { %2725 = dma.hbm_to_vmem [thread:$0]  (!%p3056_p11), %s4250_s1, 18432, %s3049_s22, [#allocation7], %s2976_s8, %s2976_s8, %s2977_s9  }
  0x2b   : > { %p29_p1 = scmp.eq.s32.totalorder %s28_s26, 0  ;;  %p38_p2 = scmp.ne.s32.totalorder %s2969_s14, %s2965_s13 }
  0x2c   : > { %p39_p4 = scmp.eq.s32.totalorder %s2973_s15, 0  ;;  %p2738_p6 = scmp.lt.s32.totalorder %s2973_s15, 2 }
  0x2d   : > { %s3095_s17 = scalar_select %p29_p1, %s2969_s14, %s31_s25  }
  0x2e   : > { %p40_p8 = por %p39_p4, %p38_p2  ;;  %p4306_p10 = scmp.eq.s32.totalorder %s3026_s16, 1 }
  0x2f   : > { %s154_s23 = sand.u32 1, %s2969_s14   ;;  %s2190_s27 = sshll.u32 %s2973_s15, 12 }
  0x30   : > { %p3099_p12 = por %p4306_p10, %p38_p2  ;;  %s2175_s28 = sshll.u32 %s154_s23, 8 }
  0x31   : > { %s3108_s4 = scalar_lea.hbm %s4249_s0, %s2190_s27  ;;  %s158_s22 = scalar_lea.vmem [#allocation3], %s2175_s28 }
  0x32   : > { %s165_s25 = sshll.u32 %s158_s22, 4  ;;  %p3110_p11 = pnand %p2738_p6, %p40_p8  ;;  %s3114_s25 = int_to_ptr.vmem [resolvable:$true] %s165_s25 }
  0x33   : > { %s3116_s5 = scalar_lea.sflag [#allocation4], %s154_s23  ;;  %s2841_s6 = scalar_lea.hbm %s3108_s4, 4096 }
  0x34   : > { %p2842_p13 = scmp.ne.s32.totalorder %s3108_s4, %s2841_s6  ;;  %p2843_p0 = pneg %p3110_p11 }
  0x35   : > { %s2846_s11 = scalar_lea.hbm %s4249_s0, 8192  ;;  %p2847_p7 = scmp.lt.u32.totalorder %s3108_s4, %s4249_s0 }
  0x36   : > { %p2844_p3 = pnand %p2843_p0, %p2842_p13  ;;  %p2848_p9 = scmp.lt.u32.totalorder %s2846_s11, %s2841_s6 }
  0x37   : > { %p2850_p2 = scmp.lt.u32.totalorder %s2841_s6, %s3108_s4 }
  0x38   : > { %p2845_p5 = pneg %p2844_p3  ;;  %p2849_p1 = por %p2848_p9, %p2847_p7 }
  0x3a   : > { %p2851_p4 = por %p2850_p2, %p2849_p1 }
  0x3c   : > { %p2852_p6 = pnand %p2851_p4, %p2845_p5 }
  0x3e   : > { %2855 = shalt.err (!%p2852_p6)
}
  0x3f   : > { %s2856_s23 = scalar_lea.vmem %s3114_s25, 4096  ;;  %s2978_s29 = smov [#allocation3]  }
  0x40   : > { %p2857_p8 = scmp.ne.s32.totalorder %s3114_s25, %s2856_s23  ;;  %s2861_s30 = sshll.u32 %s2978_s29, 4  ;;  %s2862_s30 = int_to_ptr.vmem [resolvable:$false] %s2861_s30 }
  0x41   : > { %s2863_s22 = scalar_lea.vmem %s2862_s30, 8192  ;;  %p2864_p3 = scmp.lt.s32.totalorder %s3114_s25, %s2862_s30 }
  0x42   : > { %p2859_p10 = pnand %p2857_p8, %p2843_p0  ;;  %p2865_p7 = scmp.lt.s32.totalorder %s2863_s22, %s2856_s23 }
  0x44   : > { %p2860_p13 = pneg %p2859_p10  ;;  %p2866_p9 = por %p2865_p7, %p2864_p3 }
  0x46   : > { %p2867_p1 = pnand %p2866_p9, %p2860_p13 }
  0x48   : > { %2870 = shalt.err (!%p2867_p1)
}
  0x49   : > { %2729 = dma.hbm_to_vmem [thread:$0]  (!%p3110_p11), %s3108_s4, 4096, %s3114_s25, %s3116_s5, %s2976_s8, %s2976_s8, %s2977_s9  }
  0x4a   : > { %p4309_p0 = scmp.ne.s32.totalorder %s4304_s20, 0 }
  0x4c   : > { %177 = sbr.rel (%p4309_p0) target bundleno = 747 (0x2eb), region = 28 }
  0x53   : > { %s3150_s6 = sand.u32 1, %s2965_s13   ;;  %p4310_p5 = scmp.ne.s32.totalorder %s4302_s18, 0 }
  0x54   : > { %s2179_s7 = sshll.u32 %s3150_s6, 8  ;;  %s180_s10 = scalar_lea.sflag [#allocation4], %s3150_s6 }
  0x55   : > { %s3156_s26 = scalar_lea.vmem [#allocation3], %s2179_s7 }
  0x56   : > { %2944 = dma.done.wait (%p4310_p5), %s180_s10, 4096  }
  0x57   : > { %2946 = vsyncadd (%p4310_p5), %s180_s10, 4294963200  ;;  %p4311_p11 = scmp.eq.s32.totalorder %s3026_s16, 0 }
  0x59   : > { %2948 = dma.done.wait (%p4311_p11), [#allocation7], 18432   ;;  %p4312_p2 = pmov %p4311_p11 }
  0x5a   : > { %v4261_v0 = vmov 0.0|0.0   ;;  %v2980_v1 = vmov 0.0   ;;  %v614_v2 = vld [vmem:[#allocation6] sm:$0xff]  ;;  %v615_v3 = vld [vmem:[#allocation6 + $0x8] sm:$0xff]  ;;  %v616_v7 = vld [vmem:[#allocation6 + $0x10] sm:$0xff]  ;;  %s3941_s18 = scalar_lea.vmem [#allocation8], %s2179_s7 }
  0x5b   : > { %2950 = vsyncadd (%p4312_p2), [#allocation7], 4294948864  ;;  %2320 = vmatprep.subr.bf16.mxu1 %v4261_v0  ;;  %2368 = vmatprep.subr.bf16.mxu0 %v4261_v0  ;;  %248 = vst [vmem:[#allocation2 + $0x8] sm:$0xff] %v2980_v1  ;;  %v646_v4 = vld [vmem:[#allocation6 + $0x100] sm:$0xff]  ;;  %v2321_v5 = vpack.c.bf16 %v615_v3, %v614_v2  ;;  %v647_v6 = vld [vmem:[#allocation6 + $0x108] sm:$0xff]  ;;  %s2191_s20 = sshll.u32 %s3026_s16, 12 }
  0x5c   : > { %249 = vst [vmem:[#allocation2 + $0x10] sm:$0xff] %v2980_v1  ;;  %253 = vst [vmem:[#allocation2 + $0x228] sm:$0xff] %v2980_v1  ;;  %822 = vmatprep.mubr.f32.mxu1 %v2980_v1  ;;  %v617_v8 = vld [vmem:[#allocation6 + $0x18] sm:$0xff]  ;;  %v2369_v9 = vpack.c.bf16 %v647_v6, %v646_v4  ;;  %v648_v10 = vld [vmem:[#allocation6 + $0x110] sm:$0xff]  ;;  %s2043_s8 = sshll.u32 %s3941_s18, 4  ;;  %s4096_s25 = scalar_lea.hbm %s4251_s2, %s2191_s20  ;;  %s4098_s8 = int_to_ptr.vmem [resolvable:$true] %s2043_s8 }
  0x5d   : > { %254 = vst [vmem:[#allocation2 + $0x230] sm:$0xff] %v2980_v1  ;;  %257 = vst [vmem:[#allocation2 + $0x20] sm:$0xff] %v2980_v1  ;;  %v649_v11 = vld [vmem:[#allocation6 + $0x118] sm:$0xff]  ;;  %2322 = vmatpush1.bf16.msra.mxu1 %v2321_v5  ;;  %v2324_v12 = vpack.c.bf16 %v617_v8, %v616_v7  ;;  %v618_v14 = vld [vmem:[#allocation6 + $0x20] sm:$0xff]  ;;  %s2025_s5 = scalar_lea.sflag [#allocation5], %s3150_s6  ;;  %s2871_s11 = scalar_lea.vmem %s4098_s8, 4096 }
  0x5e   : > { %258 = vst [vmem:[#allocation2 + $0x40] sm:$0xff] %v2980_v1  ;;  %259 = vst [vmem:[#allocation2 + $0x60] sm:$0xff] %v2980_v1  ;;  %2370 = vmatpush1.bf16.msra.mxu0 %v2369_v9  ;;  %2323 = vmatprep.subr.bf16.mxu1 %v4261_v0  ;;  %v2372_v13 = vpack.c.bf16 %v649_v11, %v648_v10  ;;  %v619_v15 = vld [vmem:[#allocation6 + $0x28] sm:$0xff]  ;;  %v650_v16 = vld [vmem:[#allocation6 + $0x120] sm:$0xff]  ;;  %p2872_p4 = scmp.ne.s32.totalorder %s4098_s8, %s2871_s11  ;;  %s2981_s27 = smov [#allocation8]  }
  0x5f   : > { %260 = vst [vmem:[#allocation2 + $0x80] sm:$0xff] %v2980_v1  ;;  %261 = vst [vmem:[#allocation2 + $0xa0] sm:$0xff] %v2980_v1  ;;  %2371 = vmatprep.subr.bf16.mxu0 %v4261_v0  ;;  %v651_v17 = vld [vmem:[#allocation6 + $0x128] sm:$0xff]  ;;  %v2327_v18 = vpack.c.bf16 %v619_v15, %v618_v14  ;;  %v620_v20 = vld [vmem:[#allocation6 + $0x30] sm:$0xff]  ;;  %s2875_s28 = sshll.u32 %s2981_s27, 4  ;;  %s2876_s28 = int_to_ptr.vmem [resolvable:$false] %s2875_s28 }
  0x60   : > { %262 = vst [vmem:[#allocation2 + $0xc0] sm:$0xff] %v2980_v1  ;;  %263 = vst [vmem:[#allocation2 + $0xe0] sm:$0xff] %v2980_v1  ;;  %v2375_v19 = vpack.c.bf16 %v651_v17, %v650_v16  ;;  %v621_v21 = vld [vmem:[#allocation6 + $0x38] sm:$0xff]  ;;  %v652_v22 = vld [vmem:[#allocation6 + $0x130] sm:$0xff]  ;;  %p2873_p6 = pnand %p2872_p4, %p3099_p12  ;;  %s2877_s23 = scalar_lea.vmem %s2876_s28, 8192 }
  0x61   : > { %264 = vst [vmem:[#allocation2 + $0x100] sm:$0xff] %v2980_v1  ;;  %265 = vst [vmem:[#allocation2 + $0x120] sm:$0xff] %v2980_v1  ;;  %2325 = vmatpush1.bf16.msra.mxu1 %v2324_v12  ;;  %v653_v23 = vld [vmem:[#allocation6 + $0x138] sm:$0xff]  ;;  %v2330_v24 = vpack.c.bf16 %v621_v21, %v620_v20  ;;  %v622_v26 = vld [vmem:[#allocation6 + $0x40] sm:$0xff]  ;;  %p2878_p10 = scmp.lt.s32.totalorder %s4098_s8, %s2876_s28  ;;  %p2879_p13 = scmp.lt.s32.totalorder %s2877_s23, %s2871_s11 }
  0x62   : > { %266 = vst [vmem:[#allocation2 + $0x140] sm:$0xff] %v2980_v1  ;;  %267 = vst [vmem:[#allocation2 + $0x160] sm:$0xff] %v2980_v1  ;;  %2373 = vmatpush1.bf16.msra.mxu0 %v2372_v13  ;;  %2326 = vmatprep.subr.bf16.mxu1 %v4261_v0  ;;  %v2378_v25 = vpack.c.bf16 %v653_v23, %v652_v22  ;;  %v623_v27 = vld [vmem:[#allocation6 + $0x48] sm:$0xff]  ;;  %v654_v28 = vld [vmem:[#allocation6 + $0x140] sm:$0xff]  ;;  %p2874_p8 = pneg %p2873_p6 }
  0x63   : > { %268 = vst [vmem:[#allocation2 + $0x180] sm:$0xff] %v2980_v1  ;;  %269 = vst [vmem:[#allocation2 + $0x1a0] sm:$0xff] %v2980_v1  ;;  %2374 = vmatprep.subr.bf16.mxu0 %v4261_v0  ;;  %v655_v29 = vld [vmem:[#allocation6 + $0x148] sm:$0xff]  ;;  %v2333_v30 = vpack.c.bf16 %v623_v27, %v622_v26  ;;  %v624_v32 = vld [vmem:[#allocation6 + $0x50] sm:$0xff]  ;;  %p2880_p3 = por %p2879_p13, %p2878_p10 }
  0x64   : > { %270 = vst [vmem:[#allocation2 + $0x1c0] sm:$0xff] %v2980_v1  ;;  %271 = vst [vmem:[#allocation2 + $0x1e0] sm:$0xff] %v2980_v1  ;;  %v2381_v31 = vpack.c.bf16 %v655_v29, %v654_v28  ;;  %v625_v33 = vld [vmem:[#allocation6 + $0x58] sm:$0xff]  ;;  %v656_v34 = vld [vmem:[#allocation6 + $0x150] sm:$0xff] }
  0x65   : > { %272 = vst [vmem:[#allocation2 + $0x200] sm:$0xff] %v2980_v1  ;;  %275 = vst [vmem:[#allocation2 + $0x38] sm:$0xff] %v2980_v1  ;;  %2328 = vmatpush1.bf16.msra.mxu1 %v2327_v18  ;;  %v657_v35 = vld [vmem:[#allocation6 + $0x158] sm:$0xff]  ;;  %v2336_v36 = vpack.c.bf16 %v625_v33, %v624_v32  ;;  %v626_v38 = vld [vmem:[#allocation6 + $0x60] sm:$0xff]  ;;  %p2881_p7 = pnand %p2880_p3, %p2874_p8 }
  0x66   : > { %276 = vst [vmem:[#allocation2 + $0x58] sm:$0xff] %v2980_v1  ;;  %277 = vst [vmem:[#allocation2 + $0x78] sm:$0xff] %v2980_v1  ;;  %2376 = vmatpush1.bf16.msra.mxu0 %v2375_v19  ;;  %2329 = vmatprep.subr.bf16.mxu1 %v4261_v0  ;;  %v2384_v37 = vpack.c.bf16 %v657_v35, %v656_v34  ;;  %v627_v39 = vld [vmem:[#allocation6 + $0x68] sm:$0xff]  ;;  %v658_v40 = vld [vmem:[#allocation6 + $0x160] sm:$0xff] }
  0x67   : > { %278 = vst [vmem:[#allocation2 + $0x98] sm:$0xff] %v2980_v1  ;;  %279 = vst [vmem:[#allocation2 + $0xb8] sm:$0xff] %v2980_v1  ;;  %2377 = vmatprep.subr.bf16.mxu0 %v4261_v0  ;;  %v659_v41 = vld [vmem:[#allocation6 + $0x168] sm:$0xff]  ;;  %v3220_v42 = vld [vmem:[%s3156_s26] sm:$0xff]  ;;  %v2339_v43 = vpack.c.bf16 %v627_v39, %v626_v38 }
  0x68   : > { %280 = vst [vmem:[#allocation2 + $0xd8] sm:$0xff] %v2980_v1  ;;  %281 = vst [vmem:[#allocation2 + $0xf8] sm:$0xff] %v2980_v1  ;;  %v628_v44 = vld [vmem:[#allocation6 + $0x70] sm:$0xff]  ;;  %v3224_v45 = vld [vmem:[%s3156_s26 + $0x8] sm:$0xff]  ;;  %v2387_v46 = vpack.c.bf16 %v659_v41, %v658_v40 }
  0x69   : > { %282 = vst [vmem:[#allocation2 + $0x118] sm:$0xff] %v2980_v1  ;;  %283 = vst [vmem:[#allocation2 + $0x138] sm:$0xff] %v2980_v1  ;;  %2331 = vmatpush1.bf16.msra.mxu1 %v2330_v24  ;;  %v629_v47 = vld [vmem:[#allocation6 + $0x78] sm:$0xff]  ;;  %v660_v48 = vld [vmem:[#allocation6 + $0x170] sm:$0xff] }
  0x6a   : > { %284 = vst [vmem:[#allocation2 + $0x158] sm:$0xff] %v2980_v1  ;;  %285 = vst [vmem:[#allocation2 + $0x178] sm:$0xff] %v2980_v1  ;;  %2379 = vmatpush1.bf16.msra.mxu0 %v2378_v25  ;;  %2332 = vmatprep.subr.bf16.mxu1 %v4261_v0  ;;  %v3229_v49 = vld [vmem:[%s3156_s26 + $0x10] sm:$0xff]  ;;  %v661_v50 = vld [vmem:[#allocation6 + $0x178] sm:$0xff]  ;;  %v2342_v55 = vpack.c.bf16 %v629_v47, %v628_v44 }
  0x6b   : > { %286 = vst [vmem:[#allocation2 + $0x198] sm:$0xff] %v2980_v1  ;;  %287 = vst [vmem:[#allocation2 + $0x1b8] sm:$0xff] %v2980_v1  ;;  %2380 = vmatprep.subr.bf16.mxu0 %v4261_v0  ;;  %v3234_v51 = vld [vmem:[%s3156_s26 + $0x18] sm:$0xff]  ;;  %v3237_v52 = vld [vmem:[%s3156_s26 + $0x20] sm:$0xff]  ;;  %v2390_v59 = vpack.c.bf16 %v661_v50, %v660_v48 }
  0x6c   : > { %288 = vst [vmem:[#allocation2 + $0x1d8] sm:$0xff] %v2980_v1  ;;  %289 = vst [vmem:[#allocation2 + $0x1f8] sm:$0xff] %v2980_v1  ;;  %v3242_v53 = vld [vmem:[%s3156_s26 + $0x28] sm:$0xff]  ;;  %v3245_v54 = vld [vmem:[%s3156_s26 + $0x30] sm:$0xff] }
  0x6d   : > { %290 = vst [vmem:[#allocation2 + $0x218] sm:$0xff] %v2980_v1  ;;  %256 = vst [vmem:[#allocation2] sm:$0xff] %v2980_v1  ;;  %2334 = vmatpush1.bf16.msra.mxu1 %v2333_v30  ;;  %v630_v56 = vld [vmem:[#allocation6 + $0x80] sm:$0xff]  ;;  %v631_v57 = vld [vmem:[#allocation6 + $0x88] sm:$0xff] }
  0x6e   : > { %273 = vst [vmem:[#allocation2 + $0x220] sm:$0xff] %v2980_v1  ;;  %274 = vst [vmem:[#allocation2 + $0x18] sm:$0xff] %v2980_v1  ;;  %2382 = vmatpush1.bf16.msra.mxu0 %v2381_v31  ;;  %2335 = vmatprep.subr.bf16.mxu1 %v4261_v0  ;;  %v3250_v58 = vld [vmem:[%s3156_s26 + $0x38] sm:$0xff]  ;;  %v662_v60 = vld [vmem:[#allocation6 + $0x180] sm:$0xff]  ;;  %v2345_v5 = vpack.c.bf16 %v631_v57, %v630_v56 }
  0x6f   : > { %291 = vst [vmem:[#allocation2 + $0x238] sm:$0xff] %v2980_v1  ;;  %2383 = vmatprep.subr.bf16.mxu0 %v4261_v0  ;;  %293 = vst [vmem:[#allocation2 + $0x28] sm:$0xff] %v3220_v42  ;;  %v663_v61 = vld [vmem:[#allocation6 + $0x188] sm:$0xff]  ;;  %v3255_v62 = vld [vmem:[%s3156_s26 + $0x40] sm:$0xff] }
  0x70   : > { %294 = vst [vmem:[#allocation2 + $0x30] sm:$0xff] %v3224_v45  ;;  %295 = vst [vmem:[#allocation2 + $0x48] sm:$0xff] %v3229_v49  ;;  %v3262_v2 = vld [vmem:[%s3156_s26 + $0x48] sm:$0xff]  ;;  %v3265_v3 = vld [vmem:[%s3156_s26 + $0x50] sm:$0xff]  ;;  %v2393_v6 = vpack.c.bf16 %v663_v61, %v662_v60 }
  0x71   : > { %2337 = vmatpush1.bf16.msra.mxu1 %v2336_v36  ;;  %296 = vst [vmem:[#allocation2 + $0x50] sm:$0xff] %v3234_v51  ;;  %297 = vst [vmem:[#allocation2 + $0x68] sm:$0xff] %v3237_v52  ;;  %v3271_v4 = vld [vmem:[%s3156_s26 + $0x58] sm:$0xff]  ;;  %v632_v7 = vld [vmem:[#allocation6 + $0x90] sm:$0xff] }
  0x72   : > { %2385 = vmatpush1.bf16.msra.mxu0 %v2384_v37  ;;  %2338 = vmatprep.subr.bf16.mxu1 %v4261_v0  ;;  %298 = vst [vmem:[#allocation2 + $0x70] sm:$0xff] %v3242_v53  ;;  %299 = vst [vmem:[#allocation2 + $0x88] sm:$0xff] %v3245_v54  ;;  %v633_v8 = vld [vmem:[#allocation6 + $0x98] sm:$0xff]  ;;  %v3276_v9 = vld [vmem:[%s3156_s26 + $0x60] sm:$0xff] }
  0x73   : > { %2386 = vmatprep.subr.bf16.mxu0 %v4261_v0  ;;  %300 = vst [vmem:[#allocation2 + $0x90] sm:$0xff] %v3250_v58  ;;  %301 = vst [vmem:[#allocation2 + $0xa8] sm:$0xff] %v3255_v62  ;;  %v664_v10 = vld [vmem:[#allocation6 + $0x190] sm:$0xff]  ;;  %v665_v11 = vld [vmem:[#allocation6 + $0x198] sm:$0xff]  ;;  %v2348_v12 = vpack.c.bf16 %v633_v8, %v632_v7 }
  0x74   : > { %302 = vst [vmem:[#allocation2 + $0xb0] sm:$0xff] %v3262_v2  ;;  %303 = vst [vmem:[#allocation2 + $0xc8] sm:$0xff] %v3265_v3  ;;  %v2396_v13 = vpack.c.bf16 %v665_v11, %v664_v10  ;;  %v634_v14 = vld [vmem:[#allocation6 + $0xa0] sm:$0xff]  ;;  %v635_v15 = vld [vmem:[#allocation6 + $0xa8] sm:$0xff] }
  0x75   : > { %2340 = vmatpush1.bf16.msra.mxu1 %v2339_v43  ;;  %304 = vst [vmem:[#allocation2 + $0xd0] sm:$0xff] %v3271_v4  ;;  %305 = vst [vmem:[#allocation2 + $0xe8] sm:$0xff] %v3276_v9  ;;  %v666_v16 = vld [vmem:[#allocation6 + $0x1a0] sm:$0xff]  ;;  %v667_v17 = vld [vmem:[#allocation6 + $0x1a8] sm:$0xff]  ;;  %v2351_v18 = vpack.c.bf16 %v635_v15, %v634_v14 }
  0x76   : > { %2388 = vmatpush1.bf16.msra.mxu0 %v2387_v46  ;;  %2341 = vmatprep.subr.bf16.mxu1 %v4261_v0  ;;  %v3258_v63 = vld [vmem:[#allocation2 + $0x27] sm:$0xff]  ;;  %v2399_v19 = vpack.c.bf16 %v667_v17, %v666_v16  ;;  %v636_v20 = vld [vmem:[#allocation6 + $0xb0] sm:$0xff]  ;;  %v637_v21 = vld [vmem:[#allocation6 + $0xb8] sm:$0xff] }
  0x77   : > { %2389 = vmatprep.subr.bf16.mxu0 %v4261_v0  ;;  %1047 = vmatprep.mubr.f32.mxu0 %v3258_v63  ;;  %v3284_v22 = vld [vmem:[%s3156_s26 + $0x68] sm:$0xff]  ;;  %v668_v23 = vld [vmem:[#allocation6 + $0x1b0] sm:$0xff]  ;;  %v669_v24 = vld [vmem:[#allocation6 + $0x1b8] sm:$0xff]  ;;  %v2354_v27 = vpack.c.bf16 %v637_v21, %v636_v20 }
  0x78   : > { %306 = vst [vmem:[#allocation2 + $0xf0] sm:$0xff] %v3284_v22  ;;  %v3289_v25 = vld [vmem:[%s3156_s26 + $0x70] sm:$0xff]  ;;  %v3293_v26 = vld [vmem:[%s3156_s26 + $0x78] sm:$0xff]  ;;  %v3297_v28 = vld [vmem:[%s3156_s26 + $0x80] sm:$0xff]  ;;  %v2402_v29 = vpack.c.bf16 %v669_v24, %v668_v23 }
  0x79   : > { %2343 = vmatpush1.bf16.msra.mxu1 %v2342_v55  ;;  %307 = vst [vmem:[#allocation2 + $0x108] sm:$0xff] %v3289_v25  ;;  %308 = vst [vmem:[#allocation2 + $0x110] sm:$0xff] %v3293_v26  ;;  %v638_v30 = vld [vmem:[#allocation6 + $0xc0] sm:$0xff]  ;;  %v639_v31 = vld [vmem:[#allocation6 + $0xc8] sm:$0xff] }
  0x7a   : > { %2391 = vmatpush1.bf16.msra.mxu0 %v2390_v59  ;;  %2344 = vmatprep.subr.bf16.mxu1 %v4261_v0  ;;  %309 = vst [vmem:[#allocation2 + $0x128] sm:$0xff] %v3297_v28  ;;  %v3302_v32 = vld [vmem:[%s3156_s26 + $0x88] sm:$0xff]  ;;  %v670_v33 = vld [vmem:[#allocation6 + $0x1c0] sm:$0xff]  ;;  %v3307_v35 = vld [vmem:[%s3156_s26 + $0x90] sm:$0xff]  ;;  %v2357_v37 = vpack.c.bf16 %v639_v31, %v638_v30 }
  0x7b   : > { %2392 = vmatprep.subr.bf16.mxu0 %v4261_v0  ;;  %v671_v34 = vld [vmem:[#allocation6 + $0x1c8] sm:$0xff]  ;;  %310 = vst [vmem:[#allocation2 + $0x130] sm:$0xff] %v3302_v32  ;;  %311 = vst [vmem:[#allocation2 + $0x148] sm:$0xff] %v3307_v35  ;;  %v3311_v36 = vld [vmem:[%s3156_s26 + $0x98] sm:$0xff] }
  0x7c   : > { %312 = vst [vmem:[#allocation2 + $0x150] sm:$0xff] %v3311_v36  ;;  %v3315_v38 = vld [vmem:[%s3156_s26 + $0xa0] sm:$0xff]  ;;  %v2405_v39 = vpack.c.bf16 %v671_v34, %v670_v33  ;;  %v640_v40 = vld [vmem:[#allocation6 + $0xd0] sm:$0xff]  ;;  %v641_v41 = vld [vmem:[#allocation6 + $0xd8] sm:$0xff] }
  0x7d   : > { %2346 = vmatpush1.bf16.msra.mxu1 %v2345_v5  ;;  %313 = vst [vmem:[#allocation2 + $0x168] sm:$0xff] %v3315_v38  ;;  %v672_v43 = vld [vmem:[#allocation6 + $0x1d0] sm:$0xff]  ;;  %v673_v44 = vld [vmem:[#allocation6 + $0x1d8] sm:$0xff]  ;;  %v2360_v46 = vpack.c.bf16 %v641_v41, %v640_v40  ;;  %v3321_v47 = vld [vmem:[%s3156_s26 + $0xa8] sm:$0xff] }
  0x7e   : > { %2394 = vmatpush1.bf16.msra.mxu0 %v2393_v6  ;;  %2347 = vmatprep.subr.bf16.mxu1 %v4261_v0  ;;  %v2408_v48 = vpack.c.bf16 %v673_v44, %v672_v43  ;;  %v642_v50 = vld [vmem:[#allocation6 + $0xe0] sm:$0xff]  ;;  %v643_v55 = vld [vmem:[#allocation6 + $0xe8] sm:$0xff]  ;;  %314 = vst [vmem:[#allocation2 + $0x170] sm:$0xff] %v3321_v47  ;;  %v3327_v59 = vld [vmem:[%s3156_s26 + $0xb0] sm:$0xff] }
  0x7f   : > { %2395 = vmatprep.subr.bf16.mxu0 %v4261_v0  ;;  %v674_v56 = vld [vmem:[#allocation6 + $0x1e0] sm:$0xff]  ;;  %v675_v57 = vld [vmem:[#allocation6 + $0x1e8] sm:$0xff]  ;;  %315 = vst [vmem:[#allocation2 + $0x188] sm:$0xff] %v3327_v59  ;;  %v2363_v60 = vpack.c.bf16 %v643_v55, %v642_v50  ;;  %v644_v5 = vld [vmem:[#allocation6 + $0xf0] sm:$0xff] }
  0x80   : > { %v2411_v61 = vpack.c.bf16 %v675_v57, %v674_v56  ;;  %v645_v6 = vld [vmem:[#allocation6 + $0xf8] sm:$0xff]  ;;  %v676_v8 = vld [vmem:[#allocation6 + $0x1f0] sm:$0xff]  ;;  %v3337_v11 = vld [vmem:[%s3156_s26 + $0xc0] sm:$0xff] }
  0x81   : > { %2349 = vmatpush1.bf16.msra.mxu1 %v2348_v12  ;;  %v3332_v7 = vld [vmem:[%s3156_s26 + $0xb8] sm:$0xff]  ;;  %317 = vst [vmem:[#allocation2 + $0x1a8] sm:$0xff] %v3337_v11  ;;  %v2366_v12 = vpack.c.bf16 %v645_v6, %v644_v5  ;;  %v3342_v14 = vld [vmem:[%s3156_s26 + $0xc8] sm:$0xff]  ;;  %v678_v15 = vld [vmem:[#allocation6 + $0x200] sm:$0xff] }
  0x82   : > { %2397 = vmatpush1.bf16.msra.mxu0 %v2396_v13  ;;  %2350 = vmatprep.subr.bf16.mxu1 %v4261_v0  ;;  %v677_v10 = vld [vmem:[#allocation6 + $0x1f8] sm:$0xff]  ;;  %316 = vst [vmem:[#allocation2 + $0x190] sm:$0xff] %v3332_v7  ;;  %v679_v16 = vld [vmem:[#allocation6 + $0x208] sm:$0xff]  ;;  %318 = vst [vmem:[#allocation2 + $0x1b0] sm:$0xff] %v3342_v14 }
  0x83   : > { %2398 = vmatprep.subr.bf16.mxu0 %v4261_v0  ;;  %v2414_v13 = vpack.c.bf16 %v677_v10, %v676_v8  ;;  %v3347_v17 = vld [vmem:[%s3156_s26 + $0xd0] sm:$0xff]  ;;  %v325_v20 = vld [vmem:[#allocation2 + $0x7] sm:$0xff]  ;;  %v3351_v21 = vld [vmem:[%s3156_s26 + $0xd8] sm:$0xff]  ;;  %v2417_v24 = vpack.c.bf16 %v679_v16, %v678_v15 }
  0x84   : > { %319 = vst [vmem:[#allocation2 + $0x1c8] sm:$0xff] %v3347_v17  ;;  %v389_v23 = vld [vmem:[#allocation2 + $0x9] sm:$0xff]  ;;  %320 = vst [vmem:[#allocation2 + $0x1d0] sm:$0xff] %v3351_v21  ;;  %v681_v30 = vld [vmem:[#allocation6 + $0x218] sm:$0xff] }
  0x85   : > { %2352 = vmatpush1.bf16.msra.mxu1 %v2351_v18  ;;  %v710_v18 = vld [vmem:[#allocation6 + $0x300] sm:$0xff]  ;;  %v712_v34 = vld [vmem:[#allocation6 + $0x310] sm:$0xff]  ;;  %v3364_v40 = vld [vmem:[%s3156_s26 + $0xe8] sm:$0xff] }
  0x86   : > { %2400 = vmatpush1.bf16.msra.mxu0 %v2399_v19  ;;  %2353 = vmatprep.subr.bf16.mxu1 %v4261_v0  ;;  %v711_v19 = vld [vmem:[#allocation6 + $0x308] sm:$0xff]  ;;  %v3359_v33 = vld [vmem:[%s3156_s26 + $0xe0] sm:$0xff]  ;;  %4313 = vst [vmem:[#allocation15_spill] sm:$0xff] %v3364_v40  ;;  %v390_v41 = vld [vmem:[#allocation2 + $0x11] sm:$0xff] }
  0x87   : > { %2401 = vmatprep.subr.bf16.mxu0 %v4261_v0  ;;  %v3356_v31 = vpack.c.bf16 %v711_v19, %v710_v18  ;;  %321 = vst [vmem:[#allocation2 + $0x1e8] sm:$0xff] %v3359_v33  ;;  %v682_v44 = vld [vmem:[#allocation6 + $0x220] sm:$0xff]  ;;  %322 = vst [vmem:[#allocation2 + $0x1f0] sm:$0xff] %v3364_v40  ;;  %v715_v56 = vld [vmem:[#allocation6 + $0x328] sm:$0xff] }
  0x88   : > { %v714_v55 = vld [vmem:[#allocation6 + $0x320] sm:$0xff]  ;;  %v3377_v57 = vld [vmem:[#allocation2 + $0x29] sm:$0xff]  ;;  %v685_v8 = vld [vmem:[#allocation6 + $0x238] sm:$0xff] }
  0x89   : > { %2355 = vmatpush1.bf16.msra.mxu1 %v2354_v27  ;;  %v680_v27 = vld [vmem:[#allocation6 + $0x210] sm:$0xff]  ;;  %v3384_v10 = vpack.c.bf16 %v715_v56, %v714_v55  ;;  %v425_v16 = vld [vmem:[#allocation2 + $0x67] sm:$0xff] }
  0x8a   : > { %2403 = vmatpush1.bf16.msra.mxu0 %v2402_v29  ;;  %2356 = vmatprep.subr.bf16.mxu1 %v4261_v0  ;;  %v422_v29 = vld [vmem:[#allocation2 + $0x2f] sm:$0xff]  ;;  %v2420_v43 = vpack.c.bf16 %v681_v30, %v680_v27  ;;  %v686_v18 = vld [vmem:[#allocation6 + $0x240] sm:$0xff] }
  0x8b   : > { %2404 = vmatprep.subr.bf16.mxu0 %v4261_v0  ;;  %v424_v5 = vld [vmem:[#allocation2 + $0x4f] sm:$0xff]  ;;  %v722_v55 = vld [vmem:[#allocation6 + $0x360] sm:$0xff] }
  0x8c   : > { %v684_v6 = vld [vmem:[#allocation6 + $0x230] sm:$0xff]  ;;  %v687_v19 = vld [vmem:[#allocation6 + $0x248] sm:$0xff] }
  0x8d   : > { %2358 = vmatpush1.bf16.msra.mxu1 %v2357_v37  ;;  %v713_v37 = vld [vmem:[#allocation6 + $0x318] sm:$0xff]  ;;  %v2426_v15 = vpack.c.bf16 %v685_v8, %v684_v6  ;;  %v426_v27 = vld [vmem:[#allocation2 + $0x6f] sm:$0xff] }
  0x8e   : > { %2406 = vmatpush1.bf16.msra.mxu0 %v2405_v39  ;;  %2359 = vmatprep.subr.bf16.mxu1 %v4261_v0  ;;  %v326_v39 = vld [vmem:[#allocation2 + $0xf] sm:$0xff]  ;;  %v3369_v50 = vpack.c.bf16 %v713_v37, %v712_v34  ;;  %v689_v34 = vld [vmem:[#allocation6 + $0x258] sm:$0xff] }
  0x8f   : > { %2407 = vmatprep.subr.bf16.mxu0 %v4261_v0  ;;  %v688_v30 = vld [vmem:[#allocation6 + $0x250] sm:$0xff]  ;;  %v723_v56 = vld [vmem:[#allocation6 + $0x368] sm:$0xff] }
  0x90   : > { %v720_v37 = vld [vmem:[#allocation6 + $0x350] sm:$0xff] }
  0x91   : > { %2361 = vmatpush1.bf16.msra.mxu1 %v2360_v46  ;;  %v423_v46 = vld [vmem:[#allocation2 + $0x47] sm:$0xff]  ;;  %v428_v6 = vld [vmem:[#allocation2 + $0x8f] sm:$0xff] }
  0x92   : > { %2409 = vmatpush1.bf16.msra.mxu0 %v2408_v48  ;;  %2362 = vmatprep.subr.bf16.mxu1 %v4261_v0  ;;  %v683_v48 = vld [vmem:[#allocation6 + $0x228] sm:$0xff]  ;;  %v692_v8 = vld [vmem:[#allocation6 + $0x270] sm:$0xff] }
  0x93   : > { %2410 = vmatprep.subr.bf16.mxu0 %v4261_v0 }
  0x95   : > { %2364 = vmatpush1.bf16.msra.mxu1 %v2363_v60  ;;  %v2423_v60 = vpack.c.bf16 %v683_v48, %v682_v44  ;;  %v690_v44 = vld [vmem:[#allocation6 + $0x260] sm:$0xff]  ;;  %v691_v48 = vld [vmem:[#allocation6 + $0x268] sm:$0xff] }
  0x96   : > { %2412 = vmatpush1.bf16.msra.mxu0 %v2411_v61  ;;  %2365 = vmatprep.subr.bf16.mxu1 %v4261_v0  ;;  %v3380_v61 = vld [vmem:[%s3156_s26 + $0xf8] sm:$0xff] }
  0x97   : > { %2413 = vmatprep.subr.bf16.mxu0 %v4261_v0  ;;  %4315 = vst [vmem:[#allocation17_spill] sm:$0xff] %v3380_v61  ;;  %324 = vst [vmem:[#allocation2 + $0x210] sm:$0xff] %v3380_v61 }
  0x99   : > { %2367 = vmatpush1.bf16.msra.mxu1 %v2366_v12  ;;  %v717_v12 = vld [vmem:[#allocation6 + $0x338] sm:$0xff] }
  0x9a   : > { %2415 = vmatpush1.bf16.msra.mxu0 %v2414_v13  ;;  %2544 = vmatprep.subr.bf16.mxu1 %v4261_v0  ;;  %v3391_v13 = vld [vmem:[#allocation2 + $0x31] sm:$0xff] }
  0x9b   : > { %2416 = vmatprep.subr.bf16.mxu0 %v4261_v0 }
  0x9c   : > { %823 = vmatmul.mubr.f32.vlgmr.msra.gmra.mrb[0].mxu1 %v325_v20  ;;  %v718_v20 = vld [vmem:[#allocation6 + $0x340] sm:$0xff] }
  0x9d   : > { %1048 = vmatmul.mubr.f32.vlgmr.msra.gmra.mrb[0].mxu0 %v389_v23  ;;  %827 = vmatprep.mubr.f32.mxu1 %v2980_v1  ;;  %v3372_v1 = vld [vmem:[%s3156_s26 + $0xf0] sm:$0xff]  ;;  %v719_v23 = vld [vmem:[#allocation6 + $0x348] sm:$0xff] }
  0x9e   : > { %2418 = vmatpush1.bf16.msra.mxu0 %v2417_v24  ;;  %1052 = vmatprep.mubr.f32.mxu0 %v422_v29  ;;  %4314 = vst [vmem:[#allocation16_spill] sm:$0xff] %v3372_v1  ;;  %323 = vst [vmem:[#allocation2 + $0x208] sm:$0xff] %v3372_v1  ;;  %v2429_v24 = vpack.c.bf16 %v687_v19, %v686_v18  ;;  %v429_v19 = vld [vmem:[#allocation2 + $0xa7] sm:$0xff]  ;;  %v740_v1 = vld [vmem:[#allocation6 + $0x3f0] sm:$0xff] }
  0x9f   : > { %2419 = vmatprep.subr.bf16.mxu0 %v4261_v0  ;;  %2560 = vmatpush1.bf16.msra.mxu1 %v3356_v31 }
  0xa0   : > { %828 = vmatmul.mubr.f32.gmra.mrb[2].mxu1 %v326_v39  ;;  %2545 = vmatprep.subr.bf16.mxu1 %v4261_v0  ;;  %v721_v39 = vld [vmem:[#allocation6 + $0x358] sm:$0xff] }
  0xa1   : > { %1053 = vmatmul.mubr.f32.gmra.mrb[2].mxu0 %v390_v41  ;;  %832 = vmatprep.mubr.f32.mxu1 %v3220_v42  ;;  %v716_v42 = vld [vmem:[#allocation6 + $0x330] sm:$0xff]  ;;  %v2432_v41 = vpack.c.bf16 %v689_v34, %v688_v30  ;;  %v727_v30 = vld [vmem:[#allocation6 + $0x388] sm:$0xff] }
  0xa2   : > { %1057 = vmatprep.mubr.f32.mxu0 %v423_v46  ;;  %2421 = vmatpush1.bf16.msra.mxu0 %v2420_v43  ;;  %v427_v43 = vld [vmem:[#allocation2 + $0x87] sm:$0xff] }
  0xa3   : > { %2422 = vmatprep.subr.bf16.mxu0 %v4261_v0  ;;  %2561 = vmatpush1.bf16.msra.mxu1 %v3369_v50 }
  0xa4   : > { %833 = vmatmul.mubr.f32.gmra.mrb[4].mxu1 %v3258_v63  ;;  %2546 = vmatprep.subr.bf16.mxu1 %v4261_v0  ;;  %v3395_v63 = vpack.c.bf16 %v717_v12, %v716_v42  ;;  %v693_v42 = vld [vmem:[#allocation6 + $0x278] sm:$0xff]  ;;  %v724_v12 = vld [vmem:[#allocation6 + $0x370] sm:$0xff] }
  0xa5   : > { %1058 = vmatmul.mubr.f32.gmra.mrb[4].mxu0 %v3377_v57  ;;  %837 = vmatprep.mubr.f32.mxu1 %v3224_v45  ;;  %v3400_v45 = vld [vmem:[#allocation2 + $0x49] sm:$0xff]  ;;  %v2438_v18 = vpack.c.bf16 %v693_v42, %v692_v8  ;;  %v730_v42 = vld [vmem:[#allocation6 + $0x3a0] sm:$0xff] }
  0xa6   : > { %1062 = vmatprep.mubr.f32.mxu0 %v424_v5  ;;  %2424 = vmatpush1.bf16.msra.mxu0 %v2423_v60  ;;  %v2435_v60 = vpack.c.bf16 %v691_v48, %v690_v44  ;;  %v728_v44 = vld [vmem:[#allocation6 + $0x390] sm:$0xff]  ;;  %v729_v48 = vld [vmem:[#allocation6 + $0x398] sm:$0xff]  ;;  %v699_v8 = vld [vmem:[#allocation6 + $0x2a8] sm:$0xff] }
  0xa7   : > { %2425 = vmatprep.subr.bf16.mxu0 %v4261_v0  ;;  %2562 = vmatpush1.bf16.msra.mxu1 %v3384_v10 }
  0xa8   : > { %838 = vmatmul.mubr.f32.gmra.mrb[6].mxu1 %v422_v29  ;;  %2547 = vmatprep.subr.bf16.mxu1 %v4261_v0  ;;  %v3404_v29 = vpack.c.bf16 %v719_v23, %v718_v20  ;;  %v694_v20 = vld [vmem:[#allocation6 + $0x280] sm:$0xff]  ;;  %v695_v23 = vld [vmem:[#allocation6 + $0x288] sm:$0xff] }
  0xa9   : > { %1063 = vmatmul.mubr.f32.gmra.mrb[6].mxu0 %v3391_v13  ;;  %842 = vmatprep.mubr.f32.mxu1 %v3229_v49  ;;  %v3409_v49 = vld [vmem:[#allocation2 + $0x51] sm:$0xff]  ;;  %v2441_v34 = vpack.c.bf16 %v695_v23, %v694_v20 }
  0xaa   : > { %1067 = vmatprep.mubr.f32.mxu0 %v425_v16  ;;  %2427 = vmatpush1.bf16.msra.mxu0 %v2426_v15  ;;  %v725_v15 = vld [vmem:[#allocation6 + $0x378] sm:$0xff]  ;;  %v700_v20 = vld [vmem:[#allocation6 + $0x2b0] sm:$0xff] }
  0xab   : > { %2428 = vmatprep.subr.bf16.mxu0 %v4261_v0  ;;  %2563 = vmatpush1.bf16.msra.mxu1 %v3395_v63 }
  0xac   : > { %843 = vmatmul.mubr.f32.gmra.mrb[8].mxu1 %v423_v46  ;;  %2548 = vmatprep.subr.bf16.mxu1 %v4261_v0  ;;  %v3413_v46 = vpack.c.bf16 %v721_v39, %v720_v37  ;;  %v430_v37 = vld [vmem:[#allocation2 + $0xaf] sm:$0xff] }
  0xad   : > { %1068 = vmatmul.mubr.f32.gmra.mrb[8].mxu0 %v3400_v45  ;;  %847 = vmatprep.mubr.f32.mxu1 %v3234_v51  ;;  %v3418_v51 = vld [vmem:[#allocation2 + $0x69] sm:$0xff] }
  0xae   : > { %1072 = vmatprep.mubr.f32.mxu0 %v426_v27  ;;  %2430 = vmatpush1.bf16.msra.mxu0 %v2429_v24  ;;  %v726_v24 = vld [vmem:[#allocation6 + $0x380] sm:$0xff]  ;;  %v696_v39 = vld [vmem:[#allocation6 + $0x290] sm:$0xff] }
  0xaf   : > { %2431 = vmatprep.subr.bf16.mxu0 %v4261_v0  ;;  %2564 = vmatpush1.bf16.msra.mxu1 %v3404_v29 }
  0xb0   : > { %848 = vmatmul.mubr.f32.gmra.mrb[10].mxu1 %v424_v5  ;;  %2549 = vmatprep.subr.bf16.mxu1 %v4261_v0  ;;  %v3422_v5 = vpack.c.bf16 %v723_v56, %v722_v55  ;;  %v3447_v56 = vld [vmem:[#allocation2 + $0xc7] sm:$0xff] }
  0xb1   : > { %1073 = vmatmul.mubr.f32.gmra.mrb[10].mxu0 %v3409_v49  ;;  %852 = vmatprep.mubr.f32.mxu1 %v3237_v52  ;;  %v3427_v52 = vld [vmem:[#allocation2 + $0x71] sm:$0xff] }
  0xb2   : > { %1077 = vmatprep.mubr.f32.mxu0 %v427_v43  ;;  %2433 = vmatpush1.bf16.msra.mxu0 %v2432_v41  ;;  %v697_v41 = vld [vmem:[#allocation6 + $0x298] sm:$0xff] }
  0xb3   : > { %2434 = vmatprep.subr.bf16.mxu0 %v4261_v0  ;;  %2565 = vmatpush1.bf16.msra.mxu1 %v3413_v46  ;;  %v2444_v55 = vpack.c.bf16 %v697_v41, %v696_v39  ;;  %v3471_v39 = vld [vmem:[#allocation2 + $0xe7] sm:$0xff] }
  0xb4   : > { %853 = vmatmul.mubr.f32.gmra.mrb[12].mxu1 %v425_v16  ;;  %2550 = vmatprep.subr.bf16.mxu1 %v4261_v0  ;;  %v3431_v16 = vpack.c.bf16 %v725_v15, %v724_v12  ;;  %v3457_v12 = vld [vmem:[#allocation2 + $0xa9] sm:$0xff]  ;;  %v702_v41 = vld [vmem:[#allocation6 + $0x2c0] sm:$0xff] }
  0xb5   : > { %1078 = vmatmul.mubr.f32.gmra.mrb[12].mxu0 %v3418_v51  ;;  %857 = vmatprep.mubr.f32.mxu1 %v3242_v53  ;;  %v3436_v53 = vld [vmem:[#allocation2 + $0x89] sm:$0xff] }
  0xb6   : > { %1082 = vmatprep.mubr.f32.mxu0 %v428_v6  ;;  %2436 = vmatpush1.bf16.msra.mxu0 %v2435_v60  ;;  %v698_v60 = vld [vmem:[#allocation6 + $0x2a0] sm:$0xff] }
  0xb7   : > { %2437 = vmatprep.subr.bf16.mxu0 %v4261_v0  ;;  %2566 = vmatpush1.bf16.msra.mxu1 %v3422_v5  ;;  %v2447_v15 = vpack.c.bf16 %v699_v8, %v698_v60  ;;  %v3483_v8 = vld [vmem:[#allocation2 + $0xef] sm:$0xff] }
  0xb8   : > { %858 = vmatmul.mubr.f32.gmra.mrb[14].mxu1 %v426_v27  ;;  %2551 = vmatprep.subr.bf16.mxu1 %v4261_v0  ;;  %v3440_v27 = vpack.c.bf16 %v727_v30, %v726_v24  ;;  %v733_v24 = vld [vmem:[#allocation6 + $0x3b8] sm:$0xff] }
  0xb9   : > { %1083 = vmatmul.mubr.f32.gmra.mrb[14].mxu0 %v3427_v52  ;;  %862 = vmatprep.mubr.f32.mxu1 %v3245_v54  ;;  %v3445_v54 = vld [vmem:[#allocation2 + $0x91] sm:$0xff] }
  0xba   : > { %1087 = vmatprep.mubr.f32.mxu0 %v429_v19  ;;  %2439 = vmatpush1.bf16.msra.mxu0 %v2438_v18  ;;  %v3459_v18 = vld [vmem:[#allocation2 + $0xcf] sm:$0xff] }
  0xbb   : > { %2440 = vmatprep.subr.bf16.mxu0 %v4261_v0  ;;  %2567 = vmatpush1.bf16.msra.mxu1 %v3431_v16  ;;  %v3469_v30 = vld [vmem:[#allocation2 + $0xb1] sm:$0xff] }
  0xbc   : > { %863 = vmatmul.mubr.f32.gmra.mrb[16].mxu1 %v427_v43  ;;  %2552 = vmatprep.subr.bf16.mxu1 %v4261_v0  ;;  %v3451_v43 = vpack.c.bf16 %v729_v48, %v728_v44  ;;  %v735_v48 = vld [vmem:[#allocation6 + $0x3c8] sm:$0xff] }
  0xbd   : > { %1088 = vmatmul.mubr.f32.gmra.mrb[16].mxu0 %v3436_v53  ;;  %867 = vmatprep.mubr.f32.mxu1 %v3250_v58  ;;  %v731_v58 = vld [vmem:[#allocation6 + $0x3a8] sm:$0xff] }
  0xbe   : > { %1092 = vmatprep.mubr.f32.mxu0 %v430_v37  ;;  %2442 = vmatpush1.bf16.msra.mxu0 %v2441_v34  ;;  %v3463_v23 = vpack.c.bf16 %v731_v58, %v730_v42  ;;  %v704_v42 = vld [vmem:[#allocation6 + $0x2d0] sm:$0xff] }
  0xbf   : > { %2443 = vmatprep.subr.bf16.mxu0 %v4261_v0  ;;  %2568 = vmatpush1.bf16.msra.mxu1 %v3440_v27 }
  0xc0   : > { %868 = vmatmul.mubr.f32.gmra.mrb[18].mxu1 %v428_v6  ;;  %2553 = vmatprep.subr.bf16.mxu1 %v4261_v0  ;;  %v701_v6 = vld [vmem:[#allocation6 + $0x2b8] sm:$0xff] }
  0xc1   : > { %1093 = vmatmul.mubr.f32.gmra.mrb[18].mxu0 %v3445_v54  ;;  %872 = vmatprep.mubr.f32.mxu1 %v3255_v62  ;;  %v732_v62 = vld [vmem:[#allocation6 + $0x3b0] sm:$0xff]  ;;  %v2450_v34 = vpack.c.bf16 %v701_v6, %v700_v20  ;;  %v737_v20 = vld [vmem:[#allocation6 + $0x3d8] sm:$0xff] }
  0xc2   : > { %1097 = vmatprep.mubr.f32.mxu0 %v3447_v56  ;;  %2445 = vmatpush1.bf16.msra.mxu0 %v2444_v55  ;;  %v3475_v44 = vpack.c.bf16 %v733_v24, %v732_v62  ;;  %v3481_v55 = vld [vmem:[#allocation2 + $0xc9] sm:$0xff]  ;;  %v3494_v6 = vld [vmem:[#allocation2 + $0xd1] sm:$0xff] }
  0xc3   : > { %2446 = vmatprep.subr.bf16.mxu0 %v4261_v0  ;;  %2569 = vmatpush1.bf16.msra.mxu1 %v3451_v43  ;;  %v3496_v24 = vld [vmem:[#allocation2 + $0x107] sm:$0xff] }
  0xc4   : > { %873 = vmatmul.mubr.f32.gmra.mrb[20].mxu1 %v429_v19  ;;  %2554 = vmatprep.subr.bf16.mxu1 %v4261_v0  ;;  %v703_v19 = vld [vmem:[#allocation6 + $0x2c8] sm:$0xff]  ;;  %4316 = vst [vmem:[#allocation18_spill] sm:$0xff] %v3475_v44 }
  0xc5   : > { %1098 = vmatmul.mubr.f32.gmra.mrb[20].mxu0 %v3457_v12  ;;  %877 = vmatprep.mubr.f32.mxu1 %v3262_v2  ;;  %v734_v2 = vld [vmem:[#allocation6 + $0x3c0] sm:$0xff]  ;;  %v2453_v60 = vpack.c.bf16 %v703_v19, %v702_v41  ;;  %v707_v41 = vld [vmem:[#allocation6 + $0x2e8] sm:$0xff] }
  0xc6   : > { %1102 = vmatprep.mubr.f32.mxu0 %v3459_v18  ;;  %2448 = vmatpush1.bf16.msra.mxu0 %v2447_v15  ;;  %v3487_v58 = vpack.c.bf16 %v735_v48, %v734_v2  ;;  %v736_v15 = vld [vmem:[#allocation6 + $0x3d0] sm:$0xff]  ;;  %v738_v2 = vld [vmem:[#allocation6 + $0x3e0] sm:$0xff]  ;;  %v739_v48 = vld [vmem:[#allocation6 + $0x3e8] sm:$0xff] }
  0xc7   : > { %2449 = vmatprep.subr.bf16.mxu0 %v4261_v0  ;;  %2570 = vmatpush1.bf16.msra.mxu1 %v3463_v23  ;;  %v3500_v19 = vpack.c.bf16 %v737_v20, %v736_v15  ;;  %v708_v15 = vld [vmem:[#allocation6 + $0x2f0] sm:$0xff]  ;;  %v709_v20 = vld [vmem:[#allocation6 + $0x2f8] sm:$0xff]  ;;  %v3513_v61 = vpack.c.bf16 %v739_v48, %v738_v2  ;;  %v3522_v2 = vld [vmem:[#allocation2 + $0x127] sm:$0xff] }
  0xc8   : > { %878 = vmatmul.mubr.f32.gmra.mrb[22].mxu1 %v430_v37  ;;  %2555 = vmatprep.subr.bf16.mxu1 %v4261_v0  ;;  %v705_v37 = vld [vmem:[#allocation6 + $0x2d8] sm:$0xff]  ;;  %4317 = vst [vmem:[#allocation19_spill] sm:$0xff] %v3487_v58 }
  0xc9   : > { %1103 = vmatmul.mubr.f32.gmra.mrb[22].mxu0 %v3469_v30  ;;  %882 = vmatprep.mubr.f32.mxu1 %v3265_v3  ;;  %v2456_v62 = vpack.c.bf16 %v705_v37, %v704_v42  ;;  %4318 = vst [vmem:[#allocation20_spill] sm:$0xff] %v3500_v19  ;;  %v3509_v37 = vld [vmem:[#allocation2 + $0x10f] sm:$0xff]  ;;  %4320 = vst [vmem:[#allocation22_spill] sm:$0xff] %v3513_v61 }
  0xca   : > { %1107 = vmatprep.mubr.f32.mxu0 %v3471_v39  ;;  %2451 = vmatpush1.bf16.msra.mxu0 %v2450_v34  ;;  %v706_v34 = vld [vmem:[#allocation6 + $0x2e0] sm:$0xff] }
  0xcb   : > { %2452 = vmatprep.subr.bf16.mxu0 %v4261_v0  ;;  %2571 = vmatpush1.bf16.msra.mxu1 %v3475_v44  ;;  %v2459_v42 = vpack.c.bf16 %v707_v41, %v706_v34  ;;  %v743_v34 = vld [vmem:[#allocation6 + $0x408] sm:$0xff]  ;;  %v3520_v41 = vld [vmem:[#allocation2 + $0xf1] sm:$0xff] }
  0xcc   : > { %883 = vmatmul.mubr.f32.gmra.mrb[24].mxu1 %v3447_v56  ;;  %2556 = vmatprep.subr.bf16.mxu1 %v4261_v0  ;;  %4321 = vst [vmem:[#allocation23_spill] sm:$0xff] %v3520_v41 }
  0xcd   : > { %1108 = vmatmul.mubr.f32.gmra.mrb[24].mxu0 %v3481_v55  ;;  %887 = vmatprep.mubr.f32.mxu1 %v3271_v4 }
  0xce   : > { %1112 = vmatprep.mubr.f32.mxu0 %v3483_v8  ;;  %2454 = vmatpush1.bf16.msra.mxu0 %v2453_v60  ;;  %v3507_v60 = vld [vmem:[#allocation2 + $0xe9] sm:$0xff] }
  0xcf   : > { %2455 = vmatprep.subr.bf16.mxu0 %v4261_v0  ;;  %2572 = vmatpush1.bf16.msra.mxu1 %v3487_v58  ;;  %4319 = vst [vmem:[#allocation21_spill] sm:$0xff] %v3507_v60  ;;  %v741_v58 = vld [vmem:[#allocation6 + $0x3f8] sm:$0xff] }
  0xd0   : > { %888 = vmatmul.mubr.f32.gmra.mrb[26].mxu1 %v3459_v18  ;;  %2557 = vmatprep.subr.bf16.mxu1 %v4261_v0  ;;  %v3526_v48 = vpack.c.bf16 %v741_v58, %v740_v1  ;;  %v3546_v1 = vld [vmem:[#allocation2 + $0x111] sm:$0xff]  ;;  %v3548_v58 = vld [vmem:[#allocation2 + $0x147] sm:$0xff] }
  0xd1   : > { %1113 = vmatmul.mubr.f32.gmra.mrb[26].mxu0 %v3494_v6  ;;  %892 = vmatprep.mubr.f32.mxu1 %v3276_v9  ;;  %4324 = vst [vmem:[#allocation26_spill] sm:$0xff] %v3546_v1 }
  0xd2   : > { %1117 = vmatprep.mubr.f32.mxu0 %v3496_v24  ;;  %2457 = vmatpush1.bf16.msra.mxu0 %v2456_v62  ;;  %v742_v62 = vld [vmem:[#allocation6 + $0x400] sm:$0xff]  ;;  %4322 = vst [vmem:[#allocation24_spill] sm:$0xff] %v3526_v48 }
  0xd3   : > { %2458 = vmatprep.subr.bf16.mxu0 %v4261_v0  ;;  %2573 = vmatpush1.bf16.msra.mxu1 %v3500_v19  ;;  %v2462_v19 = vpack.c.bf16 %v709_v20, %v708_v15  ;;  %v3530_v44 = vpack.c.bf16 %v743_v34, %v742_v62  ;;  %v3537_v15 = vld [vmem:[#allocation2 + $0x12f] sm:$0xff]  ;;  %v3564_v34 = vld [vmem:[#allocation2 + $0x167] sm:$0xff] }
  0xd4   : > { %893 = vmatmul.mubr.f32.gmra.mrb[28].mxu1 %v3471_v39  ;;  %2558 = vmatprep.subr.bf16.mxu1 %v4261_v0  ;;  %v3556_v20 = vld [vmem:[#allocation2 + $0x14f] sm:$0xff] }
  0xd5   : > { %1118 = vmatmul.mubr.f32.gmra.mrb[28].mxu0 %v3507_v60  ;;  %897 = vmatprep.mubr.f32.mxu1 %v3284_v22  ;;  %v3562_v62 = vld [vmem:[#allocation2 + $0x131] sm:$0xff]  ;;  %v3612_v60 = vld [vmem:[#allocation2 + $0x1c7] sm:$0xff] }
  0xd6   : > { %1122 = vmatprep.mubr.f32.mxu0 %v3509_v37  ;;  %2460 = vmatpush1.bf16.msra.mxu0 %v2459_v42  ;;  %v3535_v42 = vld [vmem:[#allocation2 + $0x109] sm:$0xff]  ;;  %4326 = vst [vmem:[#allocation28_spill] sm:$0xff] %v3562_v62  ;;  %4337 = vst [vmem:[#allocation39_spill] sm:$0xff] %v3612_v60 }
  0xd7   : > { %2461 = vmatprep.subr.bf16.mxu0 %v4261_v0  ;;  %2574 = vmatpush1.bf16.msra.mxu1 %v3513_v61  ;;  %4323 = vst [vmem:[#allocation25_spill] sm:$0xff] %v3535_v42  ;;  %v3580_v61 = vld [vmem:[#allocation2 + $0x187] sm:$0xff] }
  0xd8   : > { %898 = vmatmul.mubr.f32.gmra.mrb[30].mxu1 %v3483_v8  ;;  %2559 = vmatprep.subr.bf16.mxu1 %v4261_v0  ;;  %4329 = vst [vmem:[#allocation31_spill] sm:$0xff] %v3580_v61 }
  0xd9   : > { %1123 = vmatmul.mubr.f32.gmra.mrb[30].mxu0 %v3520_v41  ;;  %902 = vmatprep.mubr.f32.mxu1 %v3289_v25  ;;  %v3604_v41 = vld [vmem:[#allocation2 + $0x1af] sm:$0xff] }
  0xda   : > { %1127 = vmatprep.mubr.f32.mxu0 %v3522_v2  ;;  %2463 = vmatpush1.bf16.msra.mxu0 %v2462_v19  ;;  %v3554_v19 = vld [vmem:[#allocation2 + $0x129] sm:$0xff]  ;;  %4335 = vst [vmem:[#allocation37_spill] sm:$0xff] %v3604_v41 }
  0xdb   : > { %2575 = vmatpush1.bf16.msra.mxu1 %v3526_v48  ;;  %2464 = vmatprep.subr.bf16.mxu0 %v4261_v0  ;;  %4325 = vst [vmem:[#allocation27_spill] sm:$0xff] %v3554_v19  ;;  %v3570_v0 = vld [vmem:[#allocation2 + $0x149] sm:$0xff] }
  0xdc   : > { %903 = vmatmul.mubr.f32.gmra.mrb[32].mxu1 %v3496_v24  ;;  %2513 = vmatprep.subr.bf16.mxu1 %v3530_v44  ;;  %4327 = vst [vmem:[#allocation29_spill] sm:$0xff] %v3570_v0  ;;  %v3572_v48 = vld [vmem:[#allocation2 + $0x16f] sm:$0xff] }
  0xdd   : > { %1128 = vmatmul.mubr.f32.gmra.mrb[32].mxu0 %v3535_v42  ;;  %907 = vmatprep.mubr.f32.mxu1 %v3293_v26  ;;  %v3596_v42 = vld [vmem:[#allocation2 + $0x1a7] sm:$0xff] }
  0xde   : > { %1132 = vmatprep.mubr.f32.mxu0 %v3537_v15  ;;  %4333 = vst [vmem:[#allocation35_spill] sm:$0xff] %v3596_v42 }
  0xe0   : > { %908 = vmatmul.mubr.f32.gmra.mrb[34].mxu1 %v3509_v37 }
  0xe1   : > { %1133 = vmatmul.mubr.f32.gmra.mrb[34].mxu0 %v3546_v1  ;;  %912 = vmatprep.mubr.f32.mxu1 %v3297_v28  ;;  %v3588_v1 = vld [vmem:[#allocation2 + $0x18f] sm:$0xff] }
  0xe2   : > { %1137 = vmatprep.mubr.f32.mxu0 %v3548_v58  ;;  %4331 = vst [vmem:[#allocation33_spill] sm:$0xff] %v3588_v1 }
  0xe4   : > { %913 = vmatmul.mubr.f32.gmra.mrb[36].mxu1 %v3522_v2 }
  0xe5   : > { %1138 = vmatmul.mubr.f32.gmra.mrb[36].mxu0 %v3554_v19  ;;  %917 = vmatprep.mubr.f32.mxu1 %v3302_v32  ;;  %v3578_v19 = vld [vmem:[#allocation2 + $0x151] sm:$0xff] }
  0xe6   : > { %1142 = vmatprep.mubr.f32.mxu0 %v3556_v20  ;;  %4328 = vst [vmem:[#allocation30_spill] sm:$0xff] %v3578_v19 }
  0xe8   : > { %918 = vmatmul.mubr.f32.gmra.mrb[38].mxu1 %v3537_v15 }
  0xe9   : > { %1143 = vmatmul.mubr.f32.gmra.mrb[38].mxu0 %v3562_v62  ;;  %922 = vmatprep.mubr.f32.mxu1 %v3307_v35  ;;  %v3586_v62 = vld [vmem:[#allocation2 + $0x169] sm:$0xff] }
  0xea   : > { %1147 = vmatprep.mubr.f32.mxu0 %v3564_v34  ;;  %4330 = vst [vmem:[#allocation32_spill] sm:$0xff] %v3586_v62 }
  0xec   : > { %923 = vmatmul.mubr.f32.gmra.mrb[40].mxu1 %v3548_v58 }
  0xed   : > { %1148 = vmatmul.mubr.f32.gmra.mrb[40].mxu0 %v3570_v0  ;;  %927 = vmatprep.mubr.f32.mxu1 %v3311_v36  ;;  %v3594_v0 = vld [vmem:[#allocation2 + $0x171] sm:$0xff] }
  0xee   : > { %1152 = vmatprep.mubr.f32.mxu0 %v3572_v48  ;;  %4332 = vst [vmem:[#allocation34_spill] sm:$0xff] %v3594_v0 }
  0xf0   : > { %928 = vmatmul.mubr.f32.gmra.mrb[42].mxu1 %v3556_v20 }
  0xf1   : > { %1153 = vmatmul.mubr.f32.gmra.mrb[42].mxu0 %v3578_v19  ;;  %932 = vmatprep.mubr.f32.mxu1 %v3315_v38  ;;  %v3602_v19 = vld [vmem:[#allocation2 + $0x189] sm:$0xff] }
  0xf2   : > { %1157 = vmatprep.mubr.f32.mxu0 %v3580_v61  ;;  %4334 = vst [vmem:[#allocation36_spill] sm:$0xff] %v3602_v19 }
  0xf4   : > { %933 = vmatmul.mubr.f32.gmra.mrb[44].mxu1 %v3564_v34 }
  0xf5   : > { %1158 = vmatmul.mubr.f32.gmra.mrb[44].mxu0 %v3586_v62  ;;  %937 = vmatprep.mubr.f32.mxu1 %v3321_v47  ;;  %v3610_v62 = vld [vmem:[#allocation2 + $0x191] sm:$0xff] }
  0xf6   : > { %1162 = vmatprep.mubr.f32.mxu0 %v3588_v1  ;;  %4336 = vst [vmem:[#allocation38_spill] sm:$0xff] %v3610_v62 }
  0xf8   : > { %938 = vmatmul.mubr.f32.gmra.mrb[46].mxu1 %v3572_v48 }
  0xf9   : > { %1163 = vmatmul.mubr.f32.gmra.mrb[46].mxu0 %v3594_v0  ;;  %942 = vmatprep.mubr.f32.mxu1 %v3327_v59  ;;  %v3618_v0 = vld [vmem:[#allocation2 + $0x1a9] sm:$0xff] }
  0xfa   : > { %1167 = vmatprep.mubr.f32.mxu0 %v3596_v42  ;;  %4338 = vst [vmem:[#allocation40_spill] sm:$0xff] %v3618_v0 }
  0xfc   : > { %943 = vmatmul.mubr.f32.gmra.mrb[48].mxu1 %v3580_v61  ;;  %v3620_v61 = vld [vmem:[#allocation2 + $0x1cf] sm:$0xff] }
  0xfd   : > { %1168 = vmatmul.mubr.f32.gmra.mrb[48].mxu0 %v3602_v19  ;;  %947 = vmatprep.mubr.f32.mxu1 %v3332_v7  ;;  %v3626_v19 = vld [vmem:[#allocation2 + $0x1b1] sm:$0xff] }
  0xfe   : > { %1172 = vmatprep.mubr.f32.mxu0 %v3604_v41  ;;  %4339 = vst [vmem:[#allocation41_spill] sm:$0xff] %v3626_v19 }
 0x100   : > { %948 = vmatmul.mubr.f32.gmra.mrb[50].mxu1 %v3588_v1  ;;  %v3628_v1 = vld [vmem:[#allocation2 + $0x1e7] sm:$0xff] }
 0x101   : > { %1173 = vmatmul.mubr.f32.gmra.mrb[50].mxu0 %v3610_v62  ;;  %952 = vmatprep.mubr.f32.mxu1 %v3337_v11  ;;  %4340 = vst [vmem:[#allocation42_spill] sm:$0xff] %v3628_v1  ;;  %v3634_v62 = vld [vmem:[#allocation2 + $0x1c9] sm:$0xff] }
 0x102   : > { %1177 = vmatprep.mubr.f32.mxu0 %v3612_v60  ;;  %4341 = vst [vmem:[#allocation43_spill] sm:$0xff] %v3634_v62 }
 0x104   : > { %953 = vmatmul.mubr.f32.gmra.mrb[52].mxu1 %v3596_v42  ;;  %v3636_v42 = vld [vmem:[#allocation2 + $0x1ef] sm:$0xff] }
 0x105   : > { %1178 = vmatmul.mubr.f32.gmra.mrb[52].mxu0 %v3618_v0  ;;  %957 = vmatprep.mubr.f32.mxu1 %v3342_v14  ;;  %v3642_v0 = vld [vmem:[#allocation2 + $0x1d1] sm:$0xff] }
 0x106   : > { %1182 = vmatprep.mubr.f32.mxu0 %v3620_v61  ;;  %4342 = vst [vmem:[#allocation44_spill] sm:$0xff] %v3642_v0 }
 0x108   : > { %958 = vmatmul.mubr.f32.gmra.mrb[54].mxu1 %v3604_v41  ;;  %v3644_v41 = vld [vmem:[#allocation2 + $0x207] sm:$0xff] }
 0x109   : > { %1183 = vmatmul.mubr.f32.gmra.mrb[54].mxu0 %v3626_v19  ;;  %962 = vmatprep.mubr.f32.mxu1 %v3347_v17  ;;  %4343 = vst [vmem:[#allocation45_spill] sm:$0xff] %v3644_v41  ;;  %v3650_v19 = vld [vmem:[#allocation2 + $0x1e9] sm:$0xff] }
 0x10a   : > { %1187 = vmatprep.mubr.f32.mxu0 %v3628_v1  ;;  %4344 = vst [vmem:[#allocation46_spill] sm:$0xff] %v3650_v19 }
 0x10c   : > { %963 = vmatmul.mubr.f32.gmra.mrb[56].mxu1 %v3612_v60  ;;  %v3652_v60 = vld [vmem:[#allocation2 + $0x20f] sm:$0xff] }
 0x10d   : > { %1188 = vmatmul.mubr.f32.gmra.mrb[56].mxu0 %v3634_v62  ;;  %967 = vmatprep.mubr.f32.mxu1 %v3351_v21  ;;  %4345 = vst [vmem:[#allocation47_spill] sm:$0xff] %v3652_v60  ;;  %v3658_v62 = vld [vmem:[#allocation2 + $0x1f1] sm:$0xff] }
 0x10e   : > { %1192 = vmatprep.mubr.f32.mxu0 %v3636_v42  ;;  %4346 = vst [vmem:[#allocation48_spill] sm:$0xff] %v3658_v62 }
 0x110   : > { %968 = vmatmul.mubr.f32.gmra.mrb[58].mxu1 %v3620_v61 }
 0x111   : > { %1193 = vmatmul.mubr.f32.gmra.mrb[58].mxu0 %v3642_v0  ;;  %972 = vmatprep.mubr.f32.mxu1 %v3359_v33  ;;  %v744_v0 = vld [vmem:[#allocation6 + $0x410] sm:$0xff] }
 0x112   : > { %1197 = vmatprep.mubr.f32.mxu0 %v3644_v41  ;;  %v745_v41 = vld [vmem:[#allocation6 + $0x418] sm:$0xff] }
 0x114   : > { %973 = vmatmul.mubr.f32.gmra.mrb[60].mxu1 %v3628_v1  ;;  %v2516_v1 = vpack.c.bf16 %v745_v41, %v744_v0  ;;  %v748_v0 = vld [vmem:[#allocation6 + $0x430] sm:$0xff] }
 0x115   : > { %1198 = vmatmul.mubr.f32.gmra.mrb[60].mxu0 %v3650_v19  ;;  %977 = vmatprep.mubr.f32.mxu1 %v3364_v40  ;;  %v2780_v19 = vld [vmem:[#allocation2 + $0x28] sm:$0xff]  ;;  %v4364_v41 = vld [vmem:[#allocation29_spill] sm:$0xff] }
 0x116   : > { %1202 = vmatprep.mubr.f32.mxu0 %v3652_v60  ;;  %v746_v60 = vld [vmem:[#allocation6 + $0x420] sm:$0xff]  ;;  %v747_v40 = vld [vmem:[#allocation6 + $0x428] sm:$0xff] }
 0x118   : > { %978 = vmatmul.mubr.f32.gmra.mrb[62].mxu1 %v3636_v42 }
 0x119   : > { %1203 = vmatmul.mubr.f32.gmra.mrb[62].mxu0 %v3658_v62  ;;  %1537 = vmatprep.mubr.f32.mxu1 %v3265_v3  ;;  %v4347_v62 = vmov 0.0|0.0   ;;  %v2520_v3 = vpack.c.bf16 %v747_v40, %v746_v60  ;;  %v750_v40 = vld [vmem:[#allocation6 + $0x440] sm:$0xff]  ;;  %v2796_v60 = vld [vmem:[#allocation2 + $0x128] sm:$0xff] }
 0x11a   : > { %1272 = vmatprep.mubr.f32.mxu0 %v3377_v57  ;;  %v2781_v57 = vld [vmem:[#allocation2 + $0x30] sm:$0xff] }
 0x11c   : > { %1538 = vmatmul.mubr.f32.vlgmr.msra.gmra.mrb[64].mxu1 %v3447_v56  ;;  %v751_v56 = vld [vmem:[#allocation6 + $0x448] sm:$0xff] }
 0x11d   : > { %1273 = vmatmul.mubr.f32.vlgmr.msra.gmra.mrb[0].mxu0 %v2780_v19  ;;  %1542 = vmatprep.mubr.f32.mxu1 %v3271_v4  ;;  %v749_v4 = vld [vmem:[#allocation6 + $0x438] sm:$0xff] }
 0x11e   : > { %2466 = vmatpush1.bf16.msra.mxu0 %v3356_v31  ;;  %1277 = vmatprep.mubr.f32.mxu0 %v3391_v13  ;;  %v2524_v31 = vpack.c.bf16 %v749_v4, %v748_v0  ;;  %v2782_v13 = vld [vmem:[#allocation2 + $0x48] sm:$0xff]  ;;  %v4371_v19 = vld [vmem:[#allocation17_spill] sm:$0xff] }
 0x11f   : > { %2467 = vmatprep.subr.bf16.mxu0 %v4347_v62  ;;  %2515 = vmatpush3.bf16.msra.mxu1 %v3530_v44  ;;  %v757_v44 = vld [vmem:[#allocation6 + $0x478] sm:$0xff]  ;;  %v548_v0 = vld [vmem:[#allocation2 + $0x227] sm:$0xff] }
 0x120   : > { %1543 = vmatmul.mubr.f32.gmra.mrb[66].mxu1 %v3459_v18  ;;  %2517 = vmatprep.subr.bf16.mxu1 %v2516_v1  ;;  %v753_v18 = vld [vmem:[#allocation6 + $0x458] sm:$0xff]  ;;  %v4374_v4 = vld [vmem:[#allocation36_spill] sm:$0xff] }
 0x121   : > { %1278 = vmatmul.mubr.f32.gmra.mrb[2].mxu0 %v2781_v57  ;;  %1547 = vmatprep.mubr.f32.mxu1 %v3276_v9  ;;  %v2528_v9 = vpack.c.bf16 %v751_v56, %v750_v40  ;;  %v2802_v57 = vld [vmem:[#allocation2 + $0x8] sm:$0xff] }
 0x122   : > { %1282 = vmatprep.mubr.f32.mxu0 %v3400_v45  ;;  %2469 = vmatpush1.bf16.msra.mxu0 %v3369_v50  ;;  %v2783_v50 = vld [vmem:[#allocation2 + $0x50] sm:$0xff]  ;;  %v2803_v40 = vld [vmem:[#allocation2 + $0x188] sm:$0xff] }
 0x123   : > { %2470 = vmatprep.subr.bf16.mxu0 %v4347_v62  ;;  %2519 = vmatpush3.bf16.msra.mxu1 %v2516_v1  ;;  %v752_v45 = vld [vmem:[#allocation6 + $0x450] sm:$0xff] }
 0x124   : > { %1548 = vmatmul.mubr.f32.gmra.mrb[68].mxu1 %v3471_v39  ;;  %2521 = vmatprep.subr.bf16.mxu1 %v2520_v3  ;;  %v755_v39 = vld [vmem:[#allocation6 + $0x468] sm:$0xff] }
 0x125   : > { %1283 = vmatmul.mubr.f32.gmra.mrb[4].mxu0 %v2782_v13  ;;  %1552 = vmatprep.mubr.f32.mxu1 %v3284_v22  ;;  %v2532_v22 = vpack.c.bf16 %v753_v18, %v752_v45  ;;  %v4368_v1 = vld [vmem:[#allocation16_spill] sm:$0xff] }
 0x126   : > { %1287 = vmatprep.mubr.f32.mxu0 %v3409_v49  ;;  %2472 = vmatpush1.bf16.msra.mxu0 %v3384_v10  ;;  %v2784_v10 = vld [vmem:[#allocation2 + $0x68] sm:$0xff]  ;;  %v754_v49 = vld [vmem:[#allocation6 + $0x460] sm:$0xff] }
 0x127   : > { %2473 = vmatprep.subr.bf16.mxu0 %v4347_v62  ;;  %2523 = vmatpush3.bf16.msra.mxu1 %v2520_v3  ;;  %v549_v56 = vld [vmem:[#allocation2 + $0x22f] sm:$0xff] }
 0x128   : > { %1553 = vmatmul.mubr.f32.gmra.mrb[70].mxu1 %v3483_v8  ;;  %2525 = vmatprep.subr.bf16.mxu1 %v2524_v31  ;;  %v4360_v8 = vld [vmem:[#allocation27_spill] sm:$0xff] }
 0x129   : > { %1288 = vmatmul.mubr.f32.gmra.mrb[6].mxu0 %v2783_v50  ;;  %1557 = vmatprep.mubr.f32.mxu1 %v3289_v25  ;;  %v2536_v25 = vpack.c.bf16 %v755_v39, %v754_v49  ;;  %v582_v50 = vld [vmem:[#allocation2 + $0x49] sm:$0xff] }
 0x12a   : > { %1292 = vmatprep.mubr.f32.mxu0 %v3418_v51  ;;  %2475 = vmatpush1.bf16.msra.mxu0 %v3395_v63  ;;  %v2785_v63 = vld [vmem:[#allocation2 + $0x70] sm:$0xff] }
 0x12b   : > { %2476 = vmatprep.subr.bf16.mxu0 %v4347_v62  ;;  %2527 = vmatpush3.bf16.msra.mxu1 %v2524_v31  ;;  %v756_v51 = vld [vmem:[#allocation6 + $0x470] sm:$0xff] }
 0x12c   : > { %1558 = vmatmul.mubr.f32.gmra.mrb[72].mxu1 %v3496_v24  ;;  %2529 = vmatprep.subr.bf16.mxu1 %v2528_v9  ;;  %v4362_v24 = vld [vmem:[#allocation39_spill] sm:$0xff]  ;;  %v4376_v49 = vld [vmem:[#allocation40_spill] sm:$0xff] }
 0x12d   : > { %1293 = vmatmul.mubr.f32.gmra.mrb[8].mxu0 %v2784_v10  ;;  %1562 = vmatprep.mubr.f32.mxu1 %v3293_v26  ;;  %v2540_v26 = vpack.c.bf16 %v757_v44, %v756_v51  ;;  %v583_v10 = vld [vmem:[#allocation2 + $0x51] sm:$0xff]  ;;  %v584_v39 = vld [vmem:[#allocation2 + $0x69] sm:$0xff] }
 0x12e   : > { %1297 = vmatprep.mubr.f32.mxu0 %v3427_v52  ;;  %2478 = vmatpush1.bf16.msra.mxu0 %v3404_v29  ;;  %v2786_v29 = vld [vmem:[#allocation2 + $0x88] sm:$0xff]  ;;  %v585_v44 = vld [vmem:[#allocation2 + $0x71] sm:$0xff] }
 0x12f   : > { %2479 = vmatprep.subr.bf16.mxu0 %v4347_v62  ;;  %2531 = vmatpush3.bf16.msra.mxu1 %v2528_v9  ;;  %v4350_v52 = vld [vmem:[#allocation31_spill] sm:$0xff]  ;;  %v4375_v9 = vld [vmem:[#allocation38_spill] sm:$0xff] }
 0x130   : > { %1563 = vmatmul.mubr.f32.gmra.mrb[74].mxu1 %v3509_v37  ;;  %2533 = vmatprep.subr.bf16.mxu1 %v2532_v22  ;;  %v2797_v37 = vld [vmem:[#allocation2 + $0x130] sm:$0xff]  ;;  %v2805_v51 = vld [vmem:[#allocation2 + $0x1a8] sm:$0xff] }
 0x131   : > { %1298 = vmatmul.mubr.f32.gmra.mrb[10].mxu0 %v2785_v63  ;;  %1567 = vmatprep.mubr.f32.mxu1 %v3297_v28  ;;  %v2787_v28 = vld [vmem:[#allocation2 + $0x90] sm:$0xff] }
 0x132   : > { %1302 = vmatprep.mubr.f32.mxu0 %v3436_v53  ;;  %2481 = vmatpush1.bf16.msra.mxu0 %v3413_v46  ;;  %v4348_v46 = vld [vmem:[#allocation21_spill] sm:$0xff]  ;;  %v4352_v53 = vld [vmem:[#allocation19_spill] sm:$0xff] }
 0x133   : > { %2482 = vmatprep.subr.bf16.mxu0 %v4347_v62  ;;  %2535 = vmatpush3.bf16.msra.mxu1 %v2532_v22  ;;  %v2804_v22 = vld [vmem:[#allocation2 + $0x190] sm:$0xff] }
 0x134   : > { %1568 = vmatmul.mubr.f32.gmra.mrb[76].mxu1 %v3522_v2  ;;  %2537 = vmatprep.subr.bf16.mxu1 %v2536_v25  ;;  %v2798_v2 = vld [vmem:[#allocation2 + $0x148] sm:$0xff] }
 0x135   : > { %1303 = vmatmul.mubr.f32.gmra.mrb[12].mxu0 %v2786_v29  ;;  %1572 = vmatprep.mubr.f32.mxu1 %v3302_v32  ;;  %v2788_v32 = vld [vmem:[#allocation2 + $0xa8] sm:$0xff] }
 0x136   : > { %1307 = vmatprep.mubr.f32.mxu0 %v3445_v54  ;;  %2484 = vmatpush1.bf16.msra.mxu0 %v3422_v5  ;;  %v4349_v5 = vld [vmem:[#allocation18_spill] sm:$0xff]  ;;  %v4354_v54 = vld [vmem:[#allocation25_spill] sm:$0xff]  ;;  %v586_v29 = vld [vmem:[#allocation2 + $0x89] sm:$0xff] }
 0x137   : > { %2485 = vmatprep.subr.bf16.mxu0 %v4347_v62  ;;  %2539 = vmatpush3.bf16.msra.mxu1 %v2536_v25 }
 0x138   : > { %1573 = vmatmul.mubr.f32.gmra.mrb[78].mxu1 %v3537_v15  ;;  %2541 = vmatprep.subr.bf16.mxu1 %v2540_v26  ;;  %v4367_v15 = vld [vmem:[#allocation30_spill] sm:$0xff] }
 0x139   : > { %1308 = vmatmul.mubr.f32.gmra.mrb[14].mxu0 %v2787_v28  ;;  %1577 = vmatprep.mubr.f32.mxu1 %v3307_v35  ;;  %v2789_v35 = vld [vmem:[#allocation2 + $0xb0] sm:$0xff] }
 0x13a   : > { %1312 = vmatprep.mubr.f32.mxu0 %v3457_v12  ;;  %2487 = vmatpush1.bf16.msra.mxu0 %v3431_v16  ;;  %v4351_v16 = vld [vmem:[#allocation23_spill] sm:$0xff] }
 0x13b   : > { %2488 = vmatprep.subr.bf16.mxu0 %v4347_v62  ;;  %2543 = vmatpush3.bf16.msra.mxu1 %v2540_v26  ;;  %v4356_v12 = vld [vmem:[#allocation35_spill] sm:$0xff]  ;;  %v4377_v26 = vld [vmem:[#allocation41_spill] sm:$0xff] }
 0x13c   : > { %1578 = vmatmul.mubr.f32.gmra.mrb[80].mxu1 %v3548_v58  ;;  %v4370_v58 = vld [vmem:[#allocation45_spill] sm:$0xff] }
 0x13d   : > { %1313 = vmatmul.mubr.f32.gmra.mrb[16].mxu0 %v2788_v32  ;;  %1582 = vmatprep.mubr.f32.mxu1 %v3311_v36  ;;  %v2790_v36 = vld [vmem:[#allocation2 + $0xc8] sm:$0xff] }
 0x13e   : > { %1317 = vmatprep.mubr.f32.mxu0 %v3469_v30  ;;  %2490 = vmatpush1.bf16.msra.mxu0 %v3440_v27  ;;  %v4353_v27 = vld [vmem:[#allocation33_spill] sm:$0xff]  ;;  %v4358_v30 = vld [vmem:[#allocation22_spill] sm:$0xff] }
 0x13f   : > { %2491 = vmatprep.subr.bf16.mxu0 %v4347_v62 }
 0x140   : > { %1583 = vmatmul.mubr.f32.gmra.mrb[82].mxu1 %v3556_v20  ;;  %v4372_v20 = vld [vmem:[#allocation34_spill] sm:$0xff] }
 0x141   : > { %1318 = vmatmul.mubr.f32.gmra.mrb[18].mxu0 %v2789_v35  ;;  %1587 = vmatprep.mubr.f32.mxu1 %v3315_v38  ;;  %v2791_v38 = vld [vmem:[#allocation2 + $0xd0] sm:$0xff] }
 0x142   : > { %1322 = vmatprep.mubr.f32.mxu0 %v3481_v55  ;;  %2493 = vmatpush1.bf16.msra.mxu0 %v3451_v43  ;;  %v4355_v43 = vld [vmem:[#allocation20_spill] sm:$0xff]  ;;  %v4359_v55 = vld [vmem:[#allocation37_spill] sm:$0xff] }
 0x143   : > { %2494 = vmatprep.subr.bf16.mxu0 %v4347_v62  ;;  %v2806_v35 = vld [vmem:[#allocation2 + $0x1b0] sm:$0xff] }
 0x144   : > { %1588 = vmatmul.mubr.f32.gmra.mrb[84].mxu1 %v3564_v34  ;;  %v4373_v34 = vld [vmem:[#allocation47_spill] sm:$0xff] }
 0x145   : > { %1323 = vmatmul.mubr.f32.gmra.mrb[20].mxu0 %v2790_v36  ;;  %1592 = vmatprep.mubr.f32.mxu1 %v3321_v47  ;;  %v2792_v47 = vld [vmem:[#allocation2 + $0xe8] sm:$0xff]  ;;  %v587_v36 = vld [vmem:[#allocation2 + $0x91] sm:$0xff] }
 0x146   : > { %1327 = vmatprep.mubr.f32.mxu0 %v3494_v6  ;;  %2496 = vmatpush1.bf16.msra.mxu0 %v3463_v23  ;;  %v4357_v23 = vld [vmem:[#allocation26_spill] sm:$0xff]  ;;  %v4361_v6 = vld [vmem:[#allocation24_spill] sm:$0xff] }
 0x147   : > { %2497 = vmatprep.subr.bf16.mxu0 %v4347_v62 }
 0x148   : > { %1593 = vmatmul.mubr.f32.gmra.mrb[86].mxu1 %v3572_v48  ;;  %v4366_v48 = vld [vmem:[#allocation15_spill] sm:$0xff] }
 0x149   : > { %1328 = vmatmul.mubr.f32.gmra.mrb[22].mxu0 %v2791_v38  ;;  %1597 = vmatprep.mubr.f32.mxu1 %v3327_v59  ;;  %v2793_v59 = vld [vmem:[#allocation2 + $0xf0] sm:$0xff]  ;;  %v4378_v38 = vld [vmem:[#allocation43_spill] sm:$0xff] }
 0x14a   : > { %1332 = vmatprep.mubr.f32.mxu0 %v4348_v46  ;;  %2499 = vmatpush1.bf16.msra.mxu0 %v4349_v5  ;;  %v588_v46 = vld [vmem:[#allocation2 + $0xa9] sm:$0xff] }
 0x14b   : > { %2500 = vmatprep.subr.bf16.mxu0 %v4347_v62 }
 0x14c   : > { %1598 = vmatmul.mubr.f32.gmra.mrb[88].mxu1 %v4350_v52 }
 0x14d   : > { %1333 = vmatmul.mubr.f32.gmra.mrb[24].mxu0 %v2792_v47  ;;  %1602 = vmatprep.mubr.f32.mxu1 %v3332_v7  ;;  %v2794_v7 = vld [vmem:[#allocation2 + $0x108] sm:$0xff] }
 0x14e   : > { %1337 = vmatprep.mubr.f32.mxu0 %v4351_v16  ;;  %2502 = vmatpush1.bf16.msra.mxu0 %v4352_v53  ;;  %v2807_v47 = vld [vmem:[#allocation2 + $0x1c8] sm:$0xff]  ;;  %v589_v16 = vld [vmem:[#allocation2 + $0xb1] sm:$0xff] }
 0x14f   : > { %2503 = vmatprep.subr.bf16.mxu0 %v4347_v62  ;;  %v4379_v53 = vld [vmem:[#allocation44_spill] sm:$0xff] }
 0x150   : > { %1603 = vmatmul.mubr.f32.gmra.mrb[90].mxu1 %v4353_v27  ;;  %v590_v27 = vld [vmem:[#allocation2 + $0xc9] sm:$0xff] }
 0x151   : > { %1338 = vmatmul.mubr.f32.gmra.mrb[26].mxu0 %v2793_v59  ;;  %1607 = vmatprep.mubr.f32.mxu1 %v3337_v11  ;;  %v2795_v11 = vld [vmem:[#allocation2 + $0x110] sm:$0xff] }
 0x152   : > { %1342 = vmatprep.mubr.f32.mxu0 %v4354_v54  ;;  %2505 = vmatpush1.bf16.msra.mxu0 %v4355_v43  ;;  %v2808_v43 = vld [vmem:[#allocation2 + $0x1d0] sm:$0xff] }
 0x153   : > { %2506 = vmatprep.subr.bf16.mxu0 %v4347_v62 }
 0x154   : > { %1608 = vmatmul.mubr.f32.gmra.mrb[92].mxu1 %v4356_v12  ;;  %v591_v12 = vld [vmem:[#allocation2 + $0xd1] sm:$0xff] }
 0x155   : > { %1343 = vmatmul.mubr.f32.gmra.mrb[28].mxu0 %v2794_v7  ;;  %1612 = vmatprep.mubr.f32.mxu1 %v3342_v14  ;;  %v4363_v14 = vld [vmem:[#allocation28_spill] sm:$0xff]  ;;  %v4380_v7 = vld [vmem:[#allocation46_spill] sm:$0xff] }
 0x156   : > { %1347 = vmatprep.mubr.f32.mxu0 %v4357_v23  ;;  %2508 = vmatpush1.bf16.msra.mxu0 %v4358_v30  ;;  %v592_v23 = vld [vmem:[#allocation2 + $0xe9] sm:$0xff] }
 0x157   : > { %2509 = vmatprep.subr.bf16.mxu0 %v4347_v62 }
 0x158   : > { %1613 = vmatmul.mubr.f32.gmra.mrb[94].mxu1 %v4359_v55 }
 0x159   : > { %1348 = vmatmul.mubr.f32.gmra.mrb[30].mxu0 %v2795_v11  ;;  %1617 = vmatprep.mubr.f32.mxu1 %v3347_v17  ;;  %v4365_v17 = vld [vmem:[#allocation42_spill] sm:$0xff]  ;;  %v2809_v11 = vld [vmem:[#allocation2 + $0x1e8] sm:$0xff] }
 0x15a   : > { %1352 = vmatprep.mubr.f32.mxu0 %v4360_v8  ;;  %2511 = vmatpush1.bf16.msra.mxu0 %v4361_v6  ;;  %v593_v8 = vld [vmem:[#allocation2 + $0xf1] sm:$0xff] }
 0x15b   : > { %v4381_v6 = vld [vmem:[#allocation48_spill] sm:$0xff] }
 0x15c   : > { %1618 = vmatmul.mubr.f32.gmra.mrb[96].mxu1 %v4362_v24  ;;  %v594_v24 = vld [vmem:[#allocation2 + $0x109] sm:$0xff] }
 0x15d   : > { %1353 = vmatmul.mubr.f32.gmra.mrb[32].mxu0 %v2796_v60  ;;  %1622 = vmatprep.mubr.f32.mxu1 %v3351_v21  ;;  %v2799_v21 = vld [vmem:[#allocation2 + $0x150] sm:$0xff] }
 0x15e   : > { %1357 = vmatprep.mubr.f32.mxu0 %v4363_v14  ;;  %v3784_v60 = vld [vmem:[#allocation2 + $0x209] sm:$0xff] }
 0x160   : > { %1623 = vmatmul.mubr.f32.gmra.mrb[98].mxu1 %v3620_v61  ;;  %v4369_v61 = vld [vmem:[#allocation32_spill] sm:$0xff] }
 0x161   : > { %1358 = vmatmul.mubr.f32.gmra.mrb[34].mxu0 %v2797_v37  ;;  %1627 = vmatprep.mubr.f32.mxu1 %v3359_v33  ;;  %v2800_v33 = vld [vmem:[#allocation2 + $0x168] sm:$0xff] }
 0x162   : > { %1362 = vmatprep.mubr.f32.mxu0 %v4364_v41  ;;  %v2810_v41 = vld [vmem:[#allocation2 + $0x1f0] sm:$0xff] }
 0x164   : > { %1628 = vmatmul.mubr.f32.gmra.mrb[100].mxu1 %v4365_v17  ;;  %v595_v17 = vld [vmem:[#allocation2 + $0x111] sm:$0xff] }
 0x165   : > { %1363 = vmatmul.mubr.f32.gmra.mrb[36].mxu0 %v2798_v2  ;;  %1632 = vmatprep.mubr.f32.mxu1 %v4366_v48  ;;  %v596_v2 = vld [vmem:[#allocation2 + $0x129] sm:$0xff]  ;;  %v3789_v48 = vld [vmem:[#allocation2 + $0x211] sm:$0xff] }
 0x166   : > { %1367 = vmatprep.mubr.f32.mxu0 %v4367_v15 }
 0x168   : > { %1633 = vmatmul.mubr.f32.gmra.mrb[102].mxu1 %v3636_v42  ;;  %v2801_v42 = vld [vmem:[#allocation2 + $0x170] sm:$0xff] }
 0x169   : > { %1368 = vmatmul.mubr.f32.gmra.mrb[38].mxu0 %v2799_v21  ;;  %1637 = vmatprep.mubr.f32.mxu1 %v4368_v1  ;;  %v2811_v1 = vld [vmem:[#allocation2 + $0x208] sm:$0xff] }
 0x16a   : > { %1372 = vmatprep.mubr.f32.mxu0 %v4369_v61 }
 0x16c   : > { %1638 = vmatmul.mubr.f32.gmra.mrb[104].mxu1 %v4370_v58  ;;  %v597_v58 = vld [vmem:[#allocation2 + $0x131] sm:$0xff] }
 0x16d   : > { %1373 = vmatmul.mubr.f32.gmra.mrb[40].mxu0 %v2800_v33  ;;  %1642 = vmatprep.mubr.f32.mxu1 %v4371_v19  ;;  %v598_v33 = vld [vmem:[#allocation2 + $0x149] sm:$0xff] }
 0x16e   : > { %1377 = vmatprep.mubr.f32.mxu0 %v4372_v20  ;;  %v550_v19 = vld [vmem:[#allocation2 + $0x48] sm:$0xff] }
 0x16f   : > { %v3759_v62 = vpop.f32.mrb[0].mxu1 }
 0x170   : > { %1643 = vmatmul.mubr.f32.gmra.mrb[106].mxu1 %v4373_v34  ;;  %v826_v3 = vpop.f32.mrb[1].mxu1 }
 0x171   : > { %1378 = vmatmul.mubr.f32.gmra.mrb[42].mxu0 %v2801_v42  ;;  %1647 = vmatprep.mubr.f32.mxu1 %v2802_v57  ;;  %v2812_v42 = vld [vmem:[#allocation2 + $0x210] sm:$0xff] }
 0x172   : > { %1382 = vmatprep.mubr.f32.mxu0 %v4374_v4 }
 0x173   : > { %v3763_v31 = vpop.f32.mrb[2].mxu1 }
 0x174   : > { %1648 = vmatmul.mubr.f32.gmra.mrb[108].mxu1 %v548_v0  ;;  %v831_v13 = vpop.f32.mrb[3].mxu1  ;;  %v518_v0 = vld [vmem:[#allocation2 + $0x47] sm:$0xff] }
 0x175   : > { %1383 = vmatmul.mubr.f32.gmra.mrb[44].mxu0 %v2803_v40  ;;  %1652 = vmatprep.mubr.f32.mxu1 %v2802_v57  ;;  %v599_v57 = vld [vmem:[#allocation2 + $0x151] sm:$0xff] }
 0x176   : > { %1387 = vmatprep.mubr.f32.mxu0 %v4375_v9  ;;  %v551_v13 = vld [vmem:[#allocation2 + $0x50] sm:$0xff] }
 0x177   : > { %v3766_v45 = vpop.f32.mrb[4].mxu1 }
 0x178   : > { %1653 = vmatmul.mubr.f32.gmra.mrb[110].mxu1 %v549_v56  ;;  %v836_v18 = vpop.f32.mrb[5].mxu1 }
 0x179   : > { %1388 = vmatmul.mubr.f32.gmra.mrb[46].mxu0 %v2804_v22  ;;  %2272 = vmatprep.mubr.f32.mxu1 %v582_v50  ;;  %v519_v50 = vld [vmem:[#allocation2 + $0x4f] sm:$0xff] }
 0x17a   : > { %1392 = vmatprep.mubr.f32.mxu0 %v4376_v49  ;;  %v552_v18 = vld [vmem:[#allocation2 + $0x68] sm:$0xff] }
 0x17b   : > { %v3769_v25 = vpop.f32.mrb[6].mxu1 }
 0x17c   : > { %2273 = vmatmul.mubr.f32.vlgmr.msra.gmra.mrb[112].mxu1 %v583_v10  ;;  %v841_v63 = vpop.f32.mrb[7].mxu1 }
 0x17d   : > { %1393 = vmatmul.mubr.f32.gmra.mrb[48].mxu0 %v2805_v51  ;;  %2275 = vmatprep.mubr.f32.mxu1 %v584_v39  ;;  %v520_v39 = vld [vmem:[#allocation2 + $0x67] sm:$0xff]  ;;  %v553_v63 = vld [vmem:[#allocation2 + $0x70] sm:$0xff] }
 0x17e   : > { %1397 = vmatprep.mubr.f32.mxu0 %v4377_v26 }
 0x17f   : > { %v3772_v28 = vpop.f32.mrb[8].mxu1 }
 0x180   : > { %2276 = vmatmul.mubr.f32.gmra.mrb[114].mxu1 %v585_v44  ;;  %v846_v32 = vpop.f32.mrb[9].mxu1 }
 0x181   : > { %1398 = vmatmul.mubr.f32.gmra.mrb[50].mxu0 %v2806_v35  ;;  %2278 = vmatprep.mubr.f32.mxu1 %v586_v29  ;;  %v554_v29 = vld [vmem:[#allocation2 + $0x88] sm:$0xff]  ;;  %v555_v35 = vld [vmem:[#allocation2 + $0x90] sm:$0xff] }
 0x182   : > { %1402 = vmatprep.mubr.f32.mxu0 %v4378_v38 }
 0x183   : > { %v3775_v5 = vpop.f32.mrb[10].mxu1 }
 0x184   : > { %2279 = vmatmul.mubr.f32.gmra.mrb[116].mxu1 %v587_v36  ;;  %v851_v52 = vpop.f32.mrb[11].mxu1 }
 0x185   : > { %1403 = vmatmul.mubr.f32.gmra.mrb[52].mxu0 %v2807_v47  ;;  %2281 = vmatprep.mubr.f32.mxu1 %v588_v46  ;;  %v556_v46 = vld [vmem:[#allocation2 + $0xa8] sm:$0xff] }
 0x186   : > { %1407 = vmatprep.mubr.f32.mxu0 %v4379_v53  ;;  %v612_v47 = vld [vmem:[#allocation2 + $0x229] sm:$0xff] }
 0x187   : > { %v3778_v59 = vpop.f32.mrb[12].mxu1 }
 0x188   : > { %2282 = vmatmul.mubr.f32.gmra.mrb[118].mxu1 %v589_v16  ;;  %v856_v54 = vpop.f32.mrb[13].mxu1  ;;  %v557_v16 = vld [vmem:[#allocation2 + $0xb0] sm:$0xff] }
 0x189   : > { %1408 = vmatmul.mubr.f32.gmra.mrb[54].mxu0 %v2808_v43  ;;  %2284 = vmatprep.mubr.f32.mxu1 %v590_v27  ;;  %v613_v54 = vld [vmem:[#allocation2 + $0x231] sm:$0xff] }
 0x18a   : > { %1412 = vmatprep.mubr.f32.mxu0 %v4380_v7  ;;  %v525_v43 = vld [vmem:[#allocation2 + $0xaf] sm:$0xff] }
 0x18b   : > { %v3781_v30 = vpop.f32.mrb[14].mxu1 }
 0x18c   : > { %2285 = vmatmul.mubr.f32.gmra.mrb[120].mxu1 %v591_v12  ;;  %v861_v55 = vpop.f32.mrb[15].mxu1 }
 0x18d   : > { %1413 = vmatmul.mubr.f32.gmra.mrb[56].mxu0 %v2809_v11  ;;  %2287 = vmatprep.mubr.f32.mxu1 %v592_v23 }
 0x18e   : > { %1417 = vmatprep.mubr.f32.mxu0 %v4381_v6 }
 0x18f   : > { %v3786_v14 = vpop.f32.mrb[16].mxu1 }
 0x190   : > { %2288 = vmatmul.mubr.f32.gmra.mrb[122].mxu1 %v593_v8  ;;  %v866_v37 = vpop.f32.mrb[17].mxu1 }
 0x191   : > { %1418 = vmatmul.mubr.f32.gmra.mrb[58].mxu0 %v2810_v41  ;;  %2290 = vmatprep.mubr.f32.mxu1 %v594_v24 }
 0x192   : > { %1422 = vmatprep.mubr.f32.mxu0 %v3784_v60 }
 0x193   : > { %v3791_v15 = vpop.f32.mrb[18].mxu1 }
 0x194   : > { %2291 = vmatmul.mubr.f32.gmra.mrb[124].mxu1 %v595_v17  ;;  %v871_v21 = vpop.f32.mrb[19].mxu1 }
 0x195   : > { %1423 = vmatmul.mubr.f32.gmra.mrb[60].mxu0 %v2811_v1  ;;  %2293 = vmatprep.mubr.f32.mxu1 %v596_v2 }
 0x196   : > { %1427 = vmatprep.mubr.f32.mxu0 %v3789_v48 }
 0x197   : > { %v3794_v34 = vpop.f32.mrb[20].mxu1 }
 0x198   : > { %2294 = vmatmul.mubr.f32.gmra.mrb[126].mxu1 %v597_v58  ;;  %v876_v3 = vpop.f32.mrb[21].mxu1 }
 0x199   : > { %1428 = vmatmul.mubr.f32.gmra.mrb[62].mxu0 %v2812_v42  ;;  %2296 = vmatprep.mubr.f32.mxu1 %v598_v33 }
 0x19a   : > { %1497 = vmatprep.mubr.f32.mxu0 %v550_v19 }
 0x19b   : > { %v3796_v40 = vpop.f32.mrb[22].mxu1 }
 0x19c   : > { %2297 = vmatmul.mubr.f32.gmra.mrb[128].mxu1 %v599_v57  ;;  %v881_v56 = vpop.f32.mrb[23].mxu1 }
 0x19d   : > { %1498 = vmatmul.mubr.f32.vlgmr.msra.gmra.mrb[0].mxu0 %v518_v0  ;;  %2299 = vmatprep.mubr.f32.mxu1 %v4369_v61  ;;  %v521_v61 = vld [vmem:[#allocation2 + $0x6f] sm:$0xff] }
 0x19e   : > { %1502 = vmatprep.mubr.f32.mxu0 %v551_v13 }
 0x19f   : > { %v3799_v22 = vpop.f32.mrb[24].mxu1 }
 0x1a0   : > { %2300 = vmatmul.mubr.f32.gmra.mrb[130].mxu1 %v4372_v20  ;;  %v886_v10 = vpop.f32.mrb[25].mxu1 }
 0x1a1   : > { %1503 = vmatmul.mubr.f32.gmra.mrb[2].mxu0 %v519_v50  ;;  %2302 = vmatprep.mubr.f32.mxu1 %v4374_v4  ;;  %v522_v4 = vld [vmem:[#allocation2 + $0x87] sm:$0xff] }
 0x1a2   : > { %1507 = vmatprep.mubr.f32.mxu0 %v552_v18 }
 0x1a3   : > { %v3803_v51 = vpop.f32.mrb[26].mxu1 }
 0x1a4   : > { %2303 = vmatmul.mubr.f32.gmra.mrb[132].mxu1 %v4375_v9  ;;  %v891_v44 = vpop.f32.mrb[27].mxu1 }
 0x1a5   : > { %1508 = vmatmul.mubr.f32.gmra.mrb[4].mxu0 %v520_v39  ;;  %2305 = vmatprep.mubr.f32.mxu1 %v4376_v49  ;;  %v523_v49 = vld [vmem:[#allocation2 + $0x8f] sm:$0xff] }
 0x1a6   : > { %1512 = vmatprep.mubr.f32.mxu0 %v553_v63 }
 0x1a7   : > { %v3807_v32 = vpop.f32.mrb[28].mxu1 }
 0x1a8   : > { %2306 = vmatmul.mubr.f32.gmra.mrb[134].mxu1 %v4377_v26  ;;  %v896_v20 = vpop.f32.mrb[29].mxu1 }
 0x1a9   : > { %1513 = vmatmul.mubr.f32.gmra.mrb[6].mxu0 %v521_v61  ;;  %2308 = vmatprep.mubr.f32.mxu1 %v4378_v38  ;;  %v524_v38 = vld [vmem:[#allocation2 + $0xa7] sm:$0xff] }
 0x1aa   : > { %1517 = vmatprep.mubr.f32.mxu0 %v554_v29 }
 0x1ab   : > { %v3811_v36 = vpop.f32.mrb[30].mxu1 }
 0x1ac   : > { %2309 = vmatmul.mubr.f32.gmra.mrb[136].mxu1 %v4379_v53  ;;  %v901_v9 = vpop.f32.mrb[31].mxu1 }
 0x1ad   : > { %1518 = vmatmul.mubr.f32.gmra.mrb[8].mxu0 %v522_v4  ;;  %2311 = vmatprep.mubr.f32.mxu1 %v4380_v7 }
 0x1ae   : > { %1522 = vmatprep.mubr.f32.mxu0 %v555_v35 }
 0x1af   : > { %v3815_v52 = vpop.f32.mrb[32].mxu1 }
 0x1b0   : > { %2312 = vmatmul.mubr.f32.gmra.mrb[138].mxu1 %v4381_v6  ;;  %v906_v26 = vpop.f32.mrb[33].mxu1 }
 0x1b1   : > { %1523 = vmatmul.mubr.f32.gmra.mrb[10].mxu0 %v523_v49  ;;  %2314 = vmatprep.mubr.f32.mxu1 %v3784_v60 }
 0x1b2   : > { %1527 = vmatprep.mubr.f32.mxu0 %v556_v46 }
 0x1b3   : > { %v3819_v53 = vpop.f32.mrb[34].mxu1 }
 0x1b4   : > { %2315 = vmatmul.mubr.f32.gmra.mrb[140].mxu1 %v3789_v48  ;;  %v911_v27 = vpop.f32.mrb[35].mxu1 }
 0x1b5   : > { %1528 = vmatmul.mubr.f32.gmra.mrb[12].mxu0 %v524_v38  ;;  %2317 = vmatprep.mubr.f32.mxu1 %v612_v47 }
 0x1b6   : > { %1532 = vmatprep.mubr.f32.mxu0 %v557_v16 }
 0x1b7   : > { %v3822_v12 = vpop.f32.mrb[36].mxu1 }
 0x1b8   : > { %2318 = vmatmul.mubr.f32.gmra.mrb[142].mxu1 %v613_v54  ;;  %v916_v7 = vpop.f32.mrb[37].mxu1 }
 0x1b9   : > { %1533 = vmatmul.mubr.f32.gmra.mrb[14].mxu0 %v525_v43 }
 0x1bb   : > { %v3824_v23 = vpop.f32.mrb[38].mxu1 }
 0x1bc   : > { %v921_v55 = vpop.f32.mrb[39].mxu1 }
 0x1bf   : > { %v3826_v11 = vpop.f32.mrb[40].mxu1 }
 0x1c0   : > { %v926_v8 = vpop.f32.mrb[41].mxu1 }
 0x1c3   : > { %v3828_v6 = vpop.f32.mrb[42].mxu1 }
 0x1c4   : > { %v931_v24 = vpop.f32.mrb[43].mxu1 }
 0x1c7   : > { %v3830_v60 = vpop.f32.mrb[44].mxu1 }
 0x1c8   : > { %v936_v37 = vpop.f32.mrb[45].mxu1 }
 0x1cb   : > { %v3832_v41 = vpop.f32.mrb[46].mxu1 }
 0x1cc   : > { %v941_v17 = vpop.f32.mrb[47].mxu1 }
 0x1cf   : > { %v3834_v2 = vpop.f32.mrb[48].mxu1 }
 0x1d0   : > { %v946_v48 = vpop.f32.mrb[49].mxu1 }
 0x1d3   : > { %v3836_v21 = vpop.f32.mrb[50].mxu1 }
 0x1d4   : > { %v951_v1 = vpop.f32.mrb[51].mxu1 }
 0x1d7   : > { %v3838_v58 = vpop.f32.mrb[52].mxu1 }
 0x1d8   : > { %v956_v33 = vpop.f32.mrb[53].mxu1 }
 0x1db   : > { %v3840_v19 = vpop.f32.mrb[54].mxu1 }
 0x1dc   : > { %v961_v3 = vpop.f32.mrb[55].mxu1 }
 0x1df   : > { %v3842_v42 = vpop.f32.mrb[56].mxu1 }
 0x1e0   : > { %v966_v57 = vpop.f32.mrb[57].mxu1 }
 0x1e3   : > { %v3844_v0 = vpop.f32.mrb[58].mxu1 }
 0x1e4   : > { %v971_v13 = vpop.f32.mrb[59].mxu1 }
 0x1e7   : > { %v3846_v56 = vpop.f32.mrb[60].mxu1 }
 0x1e8   : > { %v976_v50 = vpop.f32.mrb[61].mxu1 }
 0x1eb   : > { %v3848_v18 = vpop.f32.mrb[62].mxu1 }
 0x1ec   : > { %v981_v10 = vpop.f32.mrb[63].mxu1 }
 0x1ef   : > { %v1539_v39 = vpop.f32.mrb[64].mxu1 }
 0x1f0   : > { %v1541_v63 = vpop.f32.mrb[65].mxu1 }
 0x1f3   : > { %v1544_v44 = vpop.f32.mrb[66].mxu1 }
 0x1f4   : > { %v1546_v61 = vpop.f32.mrb[67].mxu1 }
 0x1f7   : > { %v1549_v29 = vpop.f32.mrb[68].mxu1 }
 0x1f8   : > { %v1551_v20 = vpop.f32.mrb[69].mxu1 }
 0x1fb   : > { %v1554_v4 = vpop.f32.mrb[70].mxu1 }
 0x1fc   : > { %v1556_v35 = vpop.f32.mrb[71].mxu1 }
 0x1ff   : > { %v1559_v9 = vpop.f32.mrb[72].mxu1 }
 0x200   : > { %v1561_v49 = vpop.f32.mrb[73].mxu1 }
 0x203   : > { %v1564_v46 = vpop.f32.mrb[74].mxu1 }
 0x204   : > { %v1566_v26 = vpop.f32.mrb[75].mxu1 }
 0x207   : > { %v1569_v38 = vpop.f32.mrb[76].mxu1 }
 0x208   : > { %v1571_v47 = vpop.f32.mrb[77].mxu1 }
 0x20b   : > { %v1574_v16 = vpop.f32.mrb[78].mxu1 }
 0x20c   : > { %v1576_v27 = vpop.f32.mrb[79].mxu1 }
 0x20f   : > { %v1579_v54 = vpop.f32.mrb[80].mxu1 }
 0x210   : > { %v1314_v43 = vpop.f32.mrb[16].mxu0  ;;  %v1581_v7 = vpop.f32.mrb[81].mxu1 }
 0x211   : > { %v2584_v55 = vadd.f32 %v1314_v43, %v3786_v14  ;;  %v1316_v8 = vpop.f32.mrb[17].mxu0 }
 0x213   : > { %v3851_v24 = vadd.f32 %v2584_v55, %v1539_v39  ;;  %v1584_v37 = vpop.f32.mrb[82].mxu1 }
 0x214   : > { %v1319_v17 = vpop.f32.mrb[18].mxu0  ;;  %v1586_v48 = vpop.f32.mrb[83].mxu1 }
 0x215   : > { %v2586_v1 = vadd.f32 %v1319_v17, %v3791_v15  ;;  %v1321_v33 = vpop.f32.mrb[19].mxu0 }
 0x217   : > { %v3854_v3 = vadd.f32 %v2586_v1, %v1544_v44  ;;  %v1589_v57 = vpop.f32.mrb[84].mxu1 }
 0x218   : > { %v1324_v13 = vpop.f32.mrb[20].mxu0  ;;  %v1591_v50 = vpop.f32.mrb[85].mxu1 }
 0x219   : > { %v2588_v10 = vadd.f32 %v1324_v13, %v3794_v34  ;;  %v1326_v63 = vpop.f32.mrb[21].mxu0 }
 0x21b   : > { %v3857_v61 = vadd.f32 %v2588_v10, %v1549_v29  ;;  %v1594_v14 = vpop.f32.mrb[86].mxu1 }
 0x21c   : > { %v1329_v20 = vpop.f32.mrb[22].mxu0  ;;  %v1596_v39 = vpop.f32.mrb[87].mxu1 }
 0x21d   : > { %v2590_v35 = vadd.f32 %v1329_v20, %v3796_v40  ;;  %v1331_v49 = vpop.f32.mrb[23].mxu0 }
 0x21f   : > { %v3860_v26 = vadd.f32 %v2590_v35, %v1554_v4  ;;  %v1599_v15 = vpop.f32.mrb[88].mxu1 }
 0x220   : > { %v1334_v47 = vpop.f32.mrb[24].mxu0  ;;  %v1601_v44 = vpop.f32.mrb[89].mxu1 }
 0x221   : > { %v2592_v27 = vadd.f32 %v1334_v47, %v3799_v22  ;;  %v1336_v43 = vpop.f32.mrb[25].mxu0 }
 0x223   : > { %v3863_v7 = vadd.f32 %v2592_v27, %v1559_v9  ;;  %v1604_v34 = vpop.f32.mrb[90].mxu1 }
 0x224   : > { %v1339_v55 = vpop.f32.mrb[26].mxu0  ;;  %v1606_v29 = vpop.f32.mrb[91].mxu1 }
 0x225   : > { %v2594_v8 = vadd.f32 %v1339_v55, %v3803_v51  ;;  %v1341_v17 = vpop.f32.mrb[27].mxu0 }
 0x227   : > { %v3866_v48 = vadd.f32 %v2594_v8, %v1564_v46  ;;  %v1609_v40 = vpop.f32.mrb[92].mxu1 }
 0x228   : > { %v1344_v1 = vpop.f32.mrb[28].mxu0  ;;  %v1611_v4 = vpop.f32.mrb[93].mxu1 }
 0x229   : > { %v2596_v33 = vadd.f32 %v1344_v1, %v3807_v32  ;;  %v1346_v13 = vpop.f32.mrb[29].mxu0 }
 0x22b   : > { %v3869_v50 = vadd.f32 %v2596_v33, %v1569_v38  ;;  %v1614_v22 = vpop.f32.mrb[94].mxu1 }
 0x22c   : > { %v1349_v10 = vpop.f32.mrb[30].mxu0  ;;  %v1616_v9 = vpop.f32.mrb[95].mxu1 }
 0x22d   : > { %v2598_v63 = vadd.f32 %v1349_v10, %v3811_v36  ;;  %v1351_v20 = vpop.f32.mrb[31].mxu0 }
 0x22f   : > { %v3872_v39 = vadd.f32 %v2598_v63, %v1574_v16  ;;  %v1619_v51 = vpop.f32.mrb[96].mxu1 }
 0x230   : > { %v1354_v35 = vpop.f32.mrb[32].mxu0  ;;  %v1621_v46 = vpop.f32.mrb[97].mxu1 }
 0x231   : > { %v2600_v49 = vadd.f32 %v1354_v35, %v3815_v52  ;;  %v1356_v47 = vpop.f32.mrb[33].mxu0 }
 0x233   : > { %v3875_v44 = vadd.f32 %v2600_v49, %v1579_v54  ;;  %v1624_v32 = vpop.f32.mrb[98].mxu1 }
 0x234   : > { %v1359_v27 = vpop.f32.mrb[34].mxu0  ;;  %v1626_v38 = vpop.f32.mrb[99].mxu1 }
 0x235   : > { %v2602_v43 = vadd.f32 %v1359_v27, %v3819_v53  ;;  %v1361_v55 = vpop.f32.mrb[35].mxu0 }
 0x237   : > { %v3878_v29 = vadd.f32 %v2602_v43, %v1584_v37  ;;  %v1629_v36 = vpop.f32.mrb[100].mxu1 }
 0x238   : > { %v1364_v8 = vpop.f32.mrb[36].mxu0  ;;  %v1631_v16 = vpop.f32.mrb[101].mxu1 }
 0x239   : > { %v2604_v17 = vadd.f32 %v1364_v8, %v3822_v12  ;;  %v1366_v1 = vpop.f32.mrb[37].mxu0 }
 0x23b   : > { %v3881_v4 = vadd.f32 %v2604_v17, %v1589_v57  ;;  %v1634_v52 = vpop.f32.mrb[102].mxu1 }
 0x23c   : > { %v1369_v33 = vpop.f32.mrb[38].mxu0  ;;  %v1636_v54 = vpop.f32.mrb[103].mxu1 }
 0x23d   : > { %v2606_v13 = vadd.f32 %v1369_v33, %v3824_v23  ;;  %v1371_v10 = vpop.f32.mrb[39].mxu0 }
 0x23f   : > { %v3884_v9 = vadd.f32 %v2606_v13, %v1594_v14  ;;  %v1639_v53 = vpop.f32.mrb[104].mxu1 }
 0x240   : > { %v1374_v63 = vpop.f32.mrb[40].mxu0  ;;  %v1641_v37 = vpop.f32.mrb[105].mxu1 }
 0x241   : > { %v2608_v20 = vadd.f32 %v1374_v63, %v3826_v11  ;;  %v1376_v35 = vpop.f32.mrb[41].mxu0 }
 0x243   : > { %v3887_v46 = vadd.f32 %v2608_v20, %v1599_v15  ;;  %v3889_v12 = vpop.f32.mrb[106].mxu1 }
 0x244   : > { %v1379_v57 = vpop.f32.mrb[42].mxu0  ;;  %v1646_v49 = vpop.f32.mrb[107].mxu1 }
 0x245   : > { %v2610_v47 = vadd.f32 %v1379_v57, %v3828_v6  ;;  %v1381_v27 = vpop.f32.mrb[43].mxu0 }
 0x247   : > { %v3892_v38 = vpop.f32.mrb[108].mxu1  ;;  %v3894_v23 = vadd.f32 %v2610_v47, %v1604_v34 }
 0x248   : > { %v1384_v14 = vpop.f32.mrb[44].mxu0  ;;  %v1651_v43 = vpop.f32.mrb[109].mxu1 }
 0x249   : > { %v2612_v55 = vadd.f32 %v1384_v14, %v3830_v60  ;;  %v1386_v8 = vpop.f32.mrb[45].mxu0 }
 0x24b   : > { %v3897_v11 = vpop.f32.mrb[110].mxu1  ;;  %v3899_v15 = vadd.f32 %v2612_v55, %v1609_v40 }
 0x24c   : > { %v1389_v16 = vpop.f32.mrb[46].mxu0  ;;  %v1656_v17 = vpop.f32.mrb[111].mxu1 }
 0x24d   : > { %v2614_v1 = vadd.f32 %v1389_v16, %v3832_v41  ;;  %v1391_v33 = vpop.f32.mrb[47].mxu0 }
 0x24f   : > { %v3902_v6 = vpop.f32.mrb[112].mxu1  ;;  %v3904_v54 = vadd.f32 %v2614_v1, %v1614_v22 }
 0x250   : > { %v1394_v34 = vpop.f32.mrb[48].mxu0  ;;  %v3906_v13 = vpop.f32.mrb[113].mxu1 }
 0x251   : > { %v2616_v10 = vadd.f32 %v1394_v34, %v3834_v2  ;;  %v1396_v60 = vpop.f32.mrb[49].mxu0 }
 0x253   : > { %v3909_v63 = vpop.f32.mrb[114].mxu1  ;;  %v3911_v37 = vadd.f32 %v2616_v10, %v1619_v51 }
 0x254   : > { %v1399_v40 = vpop.f32.mrb[50].mxu0  ;;  %v3913_v20 = vpop.f32.mrb[115].mxu1 }
 0x255   : > { %v2618_v41 = vadd.f32 %v1399_v40, %v3836_v21  ;;  %v1401_v35 = vpop.f32.mrb[51].mxu0 }
 0x257   : > { %v3916_v57 = vpop.f32.mrb[116].mxu1  ;;  %v3918_v22 = vadd.f32 %v2618_v41, %v1624_v32 }
 0x258   : > { %v1404_v49 = vpop.f32.mrb[52].mxu0  ;;  %v3920_v47 = vpop.f32.mrb[117].mxu1 }
 0x259   : > { %v2620_v2 = vadd.f32 %v1404_v49, %v3838_v58  ;;  %v1406_v27 = vpop.f32.mrb[53].mxu0 }
 0x25b   : > { %v3923_v14 = vpop.f32.mrb[118].mxu1  ;;  %v3925_v51 = vadd.f32 %v2620_v2, %v1629_v36 }
 0x25c   : > { %v1409_v43 = vpop.f32.mrb[54].mxu0  ;;  %v3927_v55 = vpop.f32.mrb[119].mxu1 }
 0x25d   : > { %v2622_v21 = vadd.f32 %v1409_v43, %v3840_v19  ;;  %v1411_v8 = vpop.f32.mrb[55].mxu0 }
 0x25f   : > { %v2286_v16 = vpop.f32.mrb[120].mxu1  ;;  %v3930_v32 = vadd.f32 %v2622_v21, %v1634_v52 }
 0x260   : > { %v1414_v17 = vpop.f32.mrb[56].mxu0  ;;  %v3933_v1 = vadd.f32 %v3854_v3, %v2286_v16  ;;  %v1764_v58 = vpop.f32.mrb[121].mxu1 }
 0x261   : > { %v2624_v33 = vadd.f32 %v1414_v17, %v3842_v42  ;;  %v1416_v34 = vpop.f32.mrb[57].mxu0  ;;  %v3937_v36 = vadd.f32 %v3851_v24, %v1764_v58 }
 0x262   : > { %1892 = vst [vmem:[%s3941_s18 + $0x48] sm:$0xff] %v3933_v1 }
 0x263   : > { %1891 = vst [vmem:[%s3941_s18 + $0x40] sm:$0xff] %v3937_v36  ;;  %v2289_v19 = vpop.f32.mrb[122].mxu1  ;;  %v3947_v3 = vadd.f32 %v2624_v33, %v1639_v53 }
 0x264   : > { %v1419_v52 = vpop.f32.mrb[58].mxu0  ;;  %v3950_v42 = vadd.f32 %v3860_v26, %v2289_v19  ;;  %v1774_v24 = vpop.f32.mrb[123].mxu1 }
 0x265   : > { %v2626_v10 = vadd.f32 %v1419_v52, %v3844_v0  ;;  %v1421_v60 = vpop.f32.mrb[59].mxu0  ;;  %v3954_v40 = vadd.f32 %v3857_v61, %v1774_v24 }
 0x266   : > { %1894 = vst [vmem:[%s3941_s18 + $0x58] sm:$0xff] %v3950_v42 }
 0x267   : > { %1893 = vst [vmem:[%s3941_s18 + $0x50] sm:$0xff] %v3954_v40  ;;  %v2292_v41 = vpop.f32.mrb[124].mxu1  ;;  %v3961_v53 = vadd.f32 %v2626_v10, %v3889_v12 }
 0x268   : > { %v1424_v35 = vpop.f32.mrb[60].mxu0  ;;  %v3964_v26 = vadd.f32 %v3866_v48, %v2292_v41  ;;  %v1784_v49 = vpop.f32.mrb[125].mxu1 }
 0x269   : > { %v2628_v0 = vadd.f32 %v1424_v35, %v3846_v56  ;;  %v1426_v2 = vpop.f32.mrb[61].mxu0  ;;  %v3968_v61 = vadd.f32 %v3863_v7, %v1784_v49 }
 0x26a   : > { %1896 = vst [vmem:[%s3941_s18 + $0x68] sm:$0xff] %v3964_v26 }
 0x26b   : > { %1895 = vst [vmem:[%s3941_s18 + $0x60] sm:$0xff] %v3968_v61  ;;  %v2295_v27 = vpop.f32.mrb[126].mxu1  ;;  %v3975_v12 = vadd.f32 %v2628_v0, %v3892_v38 }
 0x26c   : > { %v1429_v43 = vpop.f32.mrb[62].mxu0  ;;  %v3978_v48 = vadd.f32 %v3872_v39, %v2295_v27  ;;  %v1794_v21 = vpop.f32.mrb[127].mxu1 }
 0x26d   : > { %v2630_v56 = vadd.f32 %v1429_v43, %v3848_v18  ;;  %v1431_v8 = vpop.f32.mrb[63].mxu0  ;;  %v3982_v7 = vadd.f32 %v3869_v50, %v1794_v21 }
 0x26e   : > { %1898 = vst [vmem:[%s3941_s18 + $0x78] sm:$0xff] %v3978_v48 }
 0x26f   : > { %1897 = vst [vmem:[%s3941_s18 + $0x70] sm:$0xff] %v3982_v7  ;;  %v2298_v38 = vpop.f32.mrb[128].mxu1  ;;  %v3989_v16 = vadd.f32 %v2630_v56, %v3897_v11 }
 0x270   : > { %v1499_v17 = vpop.f32.mrb[0].mxu0  ;;  %v3992_v39 = vadd.f32 %v3878_v29, %v2298_v38  ;;  %v1804_v58 = vpop.f32.mrb[129].mxu1 }
 0x271   : > { %v2576_v18 = vadd.f32 %v1499_v17, %v3759_v62  ;;  %v1501_v50 = vpop.f32.mrb[1].mxu0  ;;  %v3996_v33 = vadd.f32 %v3875_v44, %v1804_v58 }
 0x272   : > { %1900 = vst [vmem:[%s3941_s18 + $0x88] sm:$0xff] %v3992_v39 }
 0x273   : > { %v1725_v34 = vadd.f32 %v2576_v18, %v3906_v13  ;;  %1899 = vst [vmem:[%s3941_s18 + $0x80] sm:$0xff] %v3996_v33  ;;  %v2301_v11 = vpop.f32.mrb[130].mxu1 }
 0x274   : > { %v1504_v19 = vpop.f32.mrb[2].mxu0  ;;  %v4004_v29 = vadd.f32 %v3884_v9, %v2301_v11  ;;  %v1814_v52 = vpop.f32.mrb[131].mxu1 }
 0x275   : > { %1883 = vst [vmem:[%s3941_s18] sm:$0xff] %v1725_v34  ;;  %v2577_v62 = vadd.f32 %v1504_v19, %v3763_v31  ;;  %v1506_v24 = vpop.f32.mrb[3].mxu0  ;;  %v4009_v44 = vadd.f32 %v3881_v4, %v1814_v52  ;;  %v1952_v60 = vmul.f32 %v1725_v34, %v1725_v34 }
 0x276   : > { %1902 = vst [vmem:[%s3941_s18 + $0x98] sm:$0xff] %v4004_v29 }
 0x277   : > { %v1730_v13 = vadd.f32 %v2577_v62, %v3902_v6  ;;  %1901 = vst [vmem:[%s3941_s18 + $0x90] sm:$0xff] %v4009_v44  ;;  %v2304_v10 = vpop.f32.mrb[132].mxu1 }
 0x278   : > { %v1509_v9 = vpop.f32.mrb[4].mxu0  ;;  %v4017_v41 = vadd.f32 %v3894_v23, %v2304_v10  ;;  %v1824_v31 = vpop.f32.mrb[133].mxu1 }
 0x279   : > { %1884 = vst [vmem:[%s3941_s18 + $0x8] sm:$0xff] %v1730_v13  ;;  %v1915_v35 = vadd.f32 %v1730_v13, %v1725_v34  ;;  %v1953_v49 = vmul.f32 %v1730_v13, %v1730_v13  ;;  %v2578_v4 = vadd.f32 %v1509_v9, %v3766_v45  ;;  %v1511_v0 = vpop.f32.mrb[5].mxu0  ;;  %v4022_v6 = vadd.f32 %v3887_v46, %v1824_v31 }
 0x27a   : > { %1904 = vst [vmem:[%s3941_s18 + $0xa8] sm:$0xff] %v4017_v41 }
 0x27b   : > { %v1984_v2 = vadd.f32 %v1953_v49, %v1952_v60  ;;  %v1735_v27 = vadd.f32 %v2578_v4, %v3913_v20  ;;  %1903 = vst [vmem:[%s3941_s18 + $0xa0] sm:$0xff] %v4022_v6  ;;  %v2307_v23 = vpop.f32.mrb[134].mxu1 }
 0x27c   : > { %v1514_v43 = vpop.f32.mrb[6].mxu0  ;;  %v4030_v21 = vadd.f32 %v3904_v54, %v2307_v23  ;;  %v1834_v45 = vpop.f32.mrb[135].mxu1 }
 0x27d   : > { %1885 = vst [vmem:[%s3941_s18 + $0x10] sm:$0xff] %v1735_v27  ;;  %v1916_v56 = vadd.f32 %v1915_v35, %v1735_v27  ;;  %v1954_v8 = vmul.f32 %v1735_v27, %v1735_v27  ;;  %v2579_v46 = vadd.f32 %v1514_v43, %v3769_v25  ;;  %v1516_v38 = vpop.f32.mrb[7].mxu0  ;;  %v4035_v17 = vadd.f32 %v3899_v15, %v1834_v45 }
 0x27e   : > { %1906 = vst [vmem:[%s3941_s18 + $0xb8] sm:$0xff] %v4030_v21 }
 0x27f   : > { %v1985_v20 = vadd.f32 %v1984_v2, %v1954_v8  ;;  %v1740_v58 = vadd.f32 %v2579_v46, %v3909_v63  ;;  %1905 = vst [vmem:[%s3941_s18 + $0xb0] sm:$0xff] %v4035_v17  ;;  %v2310_v54 = vpop.f32.mrb[136].mxu1 }
 0x280   : > { %v1519_v18 = vpop.f32.mrb[8].mxu0  ;;  %v4043_v50 = vadd.f32 %v3918_v22, %v2310_v54  ;;  %v1844_v25 = vpop.f32.mrb[137].mxu1 }
 0x281   : > { %1886 = vst [vmem:[%s3941_s18 + $0x18] sm:$0xff] %v1740_v58  ;;  %v1917_v34 = vadd.f32 %v1916_v56, %v1740_v58  ;;  %v1955_v11 = vmul.f32 %v1740_v58, %v1740_v58  ;;  %v2580_v15 = vadd.f32 %v1519_v18, %v3772_v28  ;;  %v1521_v19 = vpop.f32.mrb[9].mxu0  ;;  %v4048_v52 = vadd.f32 %v3911_v37, %v1844_v25 }
 0x282   : > { %1908 = vst [vmem:[%s3941_s18 + $0xc8] sm:$0xff] %v4043_v50 }
 0x283   : > { %v1986_v63 = vadd.f32 %v1985_v20, %v1955_v11  ;;  %v1745_v62 = vadd.f32 %v2580_v15, %v3920_v47  ;;  %1907 = vst [vmem:[%s3941_s18 + $0xc0] sm:$0xff] %v4048_v52  ;;  %v2313_v22 = vpop.f32.mrb[138].mxu1 }
 0x284   : > { %v1524_v24 = vpop.f32.mrb[10].mxu0  ;;  %v4056_v13 = vadd.f32 %v3930_v32, %v2313_v22  ;;  %v1854_v28 = vpop.f32.mrb[139].mxu1 }
 0x285   : > { %1887 = vst [vmem:[%s3941_s18 + $0x20] sm:$0xff] %v1745_v62  ;;  %v1918_v10 = vadd.f32 %v1917_v34, %v1745_v62  ;;  %v1956_v60 = vmul.f32 %v1745_v62, %v1745_v62  ;;  %v2581_v37 = vadd.f32 %v1524_v24, %v3775_v5  ;;  %v1526_v9 = vpop.f32.mrb[11].mxu0  ;;  %v4061_v31 = vadd.f32 %v3925_v51, %v1854_v28 }
 0x286   : > { %1910 = vst [vmem:[%s3941_s18 + $0xd8] sm:$0xff] %v4056_v13 }
 0x287   : > { %v1987_v47 = vadd.f32 %v1986_v63, %v1956_v60  ;;  %v1750_v35 = vadd.f32 %v2581_v37, %v3916_v57  ;;  %1909 = vst [vmem:[%s3941_s18 + $0xd0] sm:$0xff] %v4061_v31  ;;  %v2316_v32 = vpop.f32.mrb[140].mxu1 }
 0x288   : > { %v1529_v49 = vpop.f32.mrb[12].mxu0  ;;  %v4069_v4 = vadd.f32 %v3961_v53, %v2316_v32  ;;  %v1864_v5 = vpop.f32.mrb[141].mxu1 }
 0x289   : > { %1888 = vst [vmem:[%s3941_s18 + $0x28] sm:$0xff] %v1750_v35  ;;  %v1919_v51 = vadd.f32 %v1918_v10, %v1750_v35  ;;  %v1957_v0 = vmul.f32 %v1750_v35, %v1750_v35  ;;  %v2582_v2 = vadd.f32 %v1529_v49, %v3778_v59  ;;  %v1531_v27 = vpop.f32.mrb[13].mxu0  ;;  %v4074_v23 = vadd.f32 %v3947_v3, %v1864_v5 }
 0x28a   : > { %1912 = vst [vmem:[%s3941_s18 + $0xe8] sm:$0xff] %v4069_v4 }
 0x28b   : > { %v1988_v57 = vadd.f32 %v1987_v47, %v1957_v0  ;;  %v1755_v43 = vadd.f32 %v2582_v2, %v3927_v55  ;;  %1911 = vst [vmem:[%s3941_s18 + $0xe0] sm:$0xff] %v4074_v23  ;;  %v2319_v53 = vpop.f32.mrb[142].mxu1 }
 0x28c   : > { %v1534_v45 = vpop.f32.mrb[14].mxu0  ;;  %v4084_v59 = vadd.f32 %v3989_v16, %v2319_v53  ;;  %v1874_v56 = vpop.f32.mrb[143].mxu1 }
 0x28d   : > { %1889 = vst [vmem:[%s3941_s18 + $0x30] sm:$0xff] %v1755_v43  ;;  %v1920_v3 = vadd.f32 %v1919_v51, %v1755_v43  ;;  %v1958_v8 = vmul.f32 %v1755_v43, %v1755_v43  ;;  %v2583_v46 = vadd.f32 %v1534_v45, %v3781_v30  ;;  %v1536_v55 = vpop.f32.mrb[15].mxu0  ;;  %v4089_v38 = vadd.f32 %v3975_v12, %v1874_v56 }
 0x28e   : > { %1914 = vst [vmem:[%s3941_s18 + $0xf8] sm:$0xff] %v4084_v59 }
 0x28f   : > { %v1989_v16 = vadd.f32 %v1988_v57, %v1958_v8  ;;  %v1760_v20 = vadd.f32 %v2583_v46, %v3923_v14  ;;  %1913 = vst [vmem:[%s3941_s18 + $0xf0] sm:$0xff] %v4089_v38 }
 0x291   : > { %1890 = vst [vmem:[%s3941_s18 + $0x38] sm:$0xff] %v1760_v20  ;;  %v1921_v30 = vadd.f32 %v1920_v3, %v1760_v20  ;;  %v1959_v12 = vmul.f32 %v1760_v20, %v1760_v20 }
 0x292   : > { %2884 = shalt.err (!%p2881_p7)
}
 0x293   : > { %s2885_s29 = scalar_lea.hbm %s4096_s25, 4096  ;;  %s2889_s7 = scalar_lea.hbm %s4251_s2, 8192 }
 0x294   : > { %p2886_p9 = scmp.ne.s32.totalorder %s4096_s25, %s2885_s29  ;;  %p2890_p5 = scmp.lt.u32.totalorder %s4096_s25, %s4251_s2 }
 0x295   : > { %p2891_p11 = scmp.lt.u32.totalorder %s2889_s7, %s2885_s29  ;;  %p2893_p4 = scmp.lt.u32.totalorder %s2885_s29, %s4096_s25 }
 0x296   : > { %p2887_p1 = pnand %p2886_p9, %p3099_p12 }
 0x297   : > { %p2892_p2 = por %p2891_p11, %p2890_p5 }
 0x298   : > { %p2888_p0 = pneg %p2887_p1 }
 0x299   : > { %p2894_p6 = por %p2893_p4, %p2892_p2 }
 0x29b   : > { %p2895_p8 = pnand %p2894_p6, %p2888_p0 }
 0x29d   : > { %2898 = shalt.err (!%p2895_p8)
}
 0x29e   : > { %s2982_s18 = smov 128   ;;  %s2983_s20 = smov 8   ;;  %v1960_v14 = vmul.f32 %v3937_v36, %v3937_v36  ;;  %v1922_v58 = vadd.f32 %v1921_v30, %v3937_v36  ;;  %v1990_v54 = vadd.f32 %v1989_v16, %v1959_v12  ;;  %v1961_v18 = vmul.f32 %v3933_v1, %v3933_v1 }
 0x29f   : > { %2718 = dma.vmem_to_hbm [thread:$0]  (%p3099_p12), %s4098_s8, 4096, %s4096_s25, %s2025_s5, %s2982_s18, %s2982_s18, %s2983_s20   ;;  %v1962_v11 = vmul.f32 %v3954_v40, %v3954_v40  ;;  %v1963_v63 = vmul.f32 %v3950_v42, %v3950_v42  ;;  %v1964_v36 = vmul.f32 %v3968_v61, %v3968_v61  ;;  %vm2021_vm0 = vcmask 1040384  }
 0x2a0   : > { %v1923_v25 = vadd.f32 %v1922_v58, %v3933_v1  ;;  %v1991_v34 = vadd.f32 %v1990_v54, %v1960_v14  ;;  %v1965_v1 = vmul.f32 %v3964_v26, %v3964_v26  ;;  %s2182_s8 = sshll.u32 %s3150_s6, 1  ;;  %s2187_s9 = sshll.u32 %s3026_s16, 5 }
 0x2a1   : > { %s214_s4 = scalar_lea.vmem [#allocation9], %s2182_s8  ;;  %s4205_s27 = scalar_lea.hbm %s4252_s3, %s2187_s9 }
 0x2a2   : > { %v1924_v15 = vadd.f32 %v1923_v25, %v3954_v40  ;;  %v1992_v19 = vadd.f32 %v1991_v34, %v1961_v18  ;;  %v1966_v40 = vmul.f32 %v3982_v7, %v3982_v7  ;;  %s2059_s25 = sshll.u32 %s214_s4, 4  ;;  %s2030_s28 = scalar_lea.sflag [#allocation10], %s3150_s6  ;;  %s4207_s25 = int_to_ptr.vmem [resolvable:$true] %s2059_s25 }
 0x2a3   : > { %s2899_s23 = scalar_lea.vmem %s4207_s25, 32  ;;  %s2984_s16 = smov [#allocation9]  }
 0x2a4   : > { %v1925_v62 = vadd.f32 %v1924_v15, %v3950_v42  ;;  %v1993_v22 = vadd.f32 %v1992_v19, %v1962_v11  ;;  %v1967_v42 = vmul.f32 %v3978_v48, %v3978_v48  ;;  %v1982_v19 = vmul.f32 %v4089_v38, %v4089_v38  ;;  %p2900_p10 = scmp.ne.s32.totalorder %s4207_s25, %s2899_s23  ;;  %s2903_s29 = sshll.u32 %s2984_s16, 4  ;;  %s2904_s29 = int_to_ptr.vmem [resolvable:$false] %s2903_s29 }
 0x2a5   : > { %s2905_s30 = scalar_lea.vmem %s2904_s29, 64  ;;  %p2906_p7 = scmp.lt.s32.totalorder %s4207_s25, %s2904_s29 }
 0x2a6   : > { %v1926_v24 = vadd.f32 %v1925_v62, %v3968_v61  ;;  %v1994_v28 = vadd.f32 %v1993_v22, %v1963_v63  ;;  %v1968_v61 = vmul.f32 %v3996_v33, %v3996_v33  ;;  %v1983_v63 = vmul.f32 %v4084_v59, %v4084_v59  ;;  %p2901_p13 = pnand %p2900_p10, %p3099_p12  ;;  %p2907_p9 = scmp.lt.s32.totalorder %s2905_s30, %s2899_s23 }
 0x2a8   : > { %v1927_v10 = vadd.f32 %v1926_v24, %v3964_v26  ;;  %v1995_v60 = vadd.f32 %v1994_v28, %v1964_v36  ;;  %v1969_v26 = vmul.f32 %v3992_v39, %v3992_v39  ;;  %p2902_p3 = pneg %p2901_p13  ;;  %p2908_p1 = por %p2907_p9, %p2906_p7 }
 0x2aa   : > { %v1928_v37 = vadd.f32 %v1927_v10, %v3982_v7  ;;  %v1996_v9 = vadd.f32 %v1995_v60, %v1965_v1  ;;  %v1970_v7 = vmul.f32 %v4009_v44, %v4009_v44  ;;  %p2909_p0 = pnand %p2908_p1, %p2902_p3 }
 0x2ac   : > { %v1929_v47 = vadd.f32 %v1928_v37, %v3978_v48  ;;  %v1997_v35 = vadd.f32 %v1996_v9, %v1966_v40  ;;  %v1971_v48 = vmul.f32 %v4004_v29, %v4004_v29 }
 0x2ae   : > { %v1930_v32 = vadd.f32 %v1929_v47, %v3996_v33  ;;  %v1998_v49 = vadd.f32 %v1997_v35, %v1967_v42  ;;  %v1972_v33 = vmul.f32 %v4022_v6, %v4022_v6 }
 0x2b0   : > { %v1931_v5 = vadd.f32 %v1930_v32, %v3992_v39  ;;  %v1999_v51 = vadd.f32 %v1998_v49, %v1968_v61  ;;  %v1973_v39 = vmul.f32 %v4017_v41, %v4017_v41 }
 0x2b2   : > { %v2000_v0 = vadd.f32 %v1999_v51, %v1969_v26  ;;  %v1932_v2 = vadd.f32 %v1931_v5, %v4009_v44  ;;  %v1974_v44 = vmul.f32 %v4035_v17, %v4035_v17 }
 0x2b4   : > { %v1933_v27 = vadd.f32 %v1932_v2, %v4004_v29  ;;  %v2001_v57 = vadd.f32 %v2000_v0, %v1970_v7  ;;  %v1975_v29 = vmul.f32 %v4030_v21, %v4030_v21 }
 0x2b6   : > { %v1934_v43 = vadd.f32 %v1933_v27, %v4022_v6  ;;  %v2002_v53 = vadd.f32 %v2001_v57, %v1971_v48  ;;  %v1976_v6 = vmul.f32 %v4048_v52, %v4048_v52 }
 0x2b8   : > { %v1935_v45 = vadd.f32 %v1934_v43, %v4017_v41  ;;  %v2003_v56 = vadd.f32 %v2002_v53, %v1972_v33  ;;  %v1977_v41 = vmul.f32 %v4043_v50, %v4043_v50 }
 0x2ba   : > { %v1936_v3 = vadd.f32 %v1935_v45, %v4035_v17  ;;  %v2004_v8 = vadd.f32 %v2003_v56, %v1973_v39  ;;  %v1978_v17 = vmul.f32 %v4061_v31, %v4061_v31 }
 0x2bc   : > { %v1937_v46 = vadd.f32 %v1936_v3, %v4030_v21  ;;  %v2005_v55 = vadd.f32 %v2004_v8, %v1974_v44  ;;  %v1979_v21 = vmul.f32 %v4056_v13, %v4056_v13 }
 0x2be   : > { %v1938_v16 = vadd.f32 %v1937_v46, %v4048_v52  ;;  %v2006_v20 = vadd.f32 %v2005_v55, %v1975_v29  ;;  %v1980_v52 = vmul.f32 %v4074_v23, %v4074_v23 }
 0x2c0   : > { %v1939_v30 = vadd.f32 %v1938_v16, %v4043_v50  ;;  %v2007_v12 = vadd.f32 %v2006_v20, %v1976_v6  ;;  %v1981_v50 = vmul.f32 %v4069_v4, %v4069_v4 }
 0x2c2   : > { %v1940_v14 = vadd.f32 %v1939_v30, %v4061_v31  ;;  %v2008_v58 = vadd.f32 %v2007_v12, %v1977_v41 }
 0x2c4   : > { %v1941_v54 = vadd.f32 %v1940_v14, %v4056_v13  ;;  %v2009_v18 = vadd.f32 %v2008_v58, %v1978_v17 }
 0x2c6   : > { %v1942_v25 = vadd.f32 %v1941_v54, %v4074_v23  ;;  %v2010_v34 = vadd.f32 %v2009_v18, %v1979_v21 }
 0x2c8   : > { %v1943_v11 = vadd.f32 %v1942_v25, %v4069_v4  ;;  %v2011_v31 = vadd.f32 %v2010_v34, %v1980_v52 }
 0x2ca   : > { %v1944_v15 = vadd.f32 %v1943_v11, %v4089_v38  ;;  %v2012_v13 = vadd.f32 %v2011_v31, %v1981_v50 }
 0x2cc   : > { %v1945_v23 = vadd.f32 %v1944_v15, %v4084_v59  ;;  %v2013_v62 = vadd.f32 %v2012_v13, %v1982_v19 }
 0x2ce   : > { %v1946_v22 = vrot.slane %v1945_v23, 4  ;;  %v2014_v36 = vadd.f32 %v2013_v62, %v1983_v63 }
 0x2d0   : > { %v1947_v24 = vadd.f32 %v1946_v22, %v1945_v23  ;;  %v2015_v28 = vrot.slane %v2014_v36, 4 }
 0x2d2   : > { %v1948_v1 = vrot.slane %v1947_v24, 2  ;;  %v2016_v4 = vadd.f32 %v2015_v28, %v2014_v36 }
 0x2d4   : > { %v1949_v10 = vadd.f32 %v1948_v1, %v1947_v24  ;;  %v2017_v60 = vrot.slane %v2016_v4, 2 }
 0x2d6   : > { %v1950_v40 = vrot.slane %v1949_v10, 1  ;;  %v2018_v38 = vadd.f32 %v2017_v60, %v2016_v4 }
 0x2d8   : > { %v2019_v37 = vrot.slane %v2018_v38, 1  ;;  %v1951_v59 = vadd.f32 %v1950_v40, %v1949_v10 }
 0x2da   : > { %v2020_v9 = vadd.f32 %v2019_v37, %v2018_v38 }
 0x2dc   : > { %v2022_v42 = vsel %vm2021_vm0, %v1951_v59, %v2020_v9 }
 0x2dd   : > { %2023 = vst [vmem:[%s214_s4] sm:$0x3] %v2022_v42 }
 0x2de   : > { %2912 = shalt.err (!%p2909_p0)
}
 0x2df   : > { %s2913_s6 = scalar_lea.hbm %s4205_s27, 32  ;;  %s2917_s10 = scalar_lea.hbm %s4252_s3, 64 }
 0x2e0   : > { %p2914_p5 = scmp.ne.s32.totalorder %s4205_s27, %s2913_s6  ;;  %p2918_p4 = scmp.lt.u32.totalorder %s4205_s27, %s4252_s3 }
 0x2e1   : > { %p2919_p6 = scmp.lt.u32.totalorder %s2917_s10, %s2913_s6  ;;  %p2921_p10 = scmp.lt.u32.totalorder %s2913_s6, %s4205_s27 }
 0x2e2   : > { %p2915_p11 = pnand %p2914_p5, %p3099_p12 }
 0x2e3   : > { %p2920_p8 = por %p2919_p6, %p2918_p4 }
 0x2e4   : > { %p2916_p2 = pneg %p2915_p11 }
 0x2e5   : > { %p2922_p13 = por %p2921_p10, %p2920_p8 }
 0x2e7   : > { %p2923_p3 = pnand %p2922_p13, %p2916_p2 }
 0x2e9   : > { %2926 = shalt.err (!%p2923_p3)
}
 0x2ea   : > { %2719 = dma.vmem_to_hbm [thread:$0]  (%p3099_p12), %s4207_s25, 32, %s4205_s27, %s2030_s28  }
 0x2eb PF: > { %s2071_s20 = sand.u32 1, %s2961_s12   ;;  %p4382_p7 = scmp.ne.s32.totalorder %s4303_s19, 0 }
 0x2ec   : > { %p4383_p9 = scmp.ge.s32.totalorder %s2973_s15, 2  ;;  %s2072_s8 = scalar_lea.sflag [#allocation5], %s2071_s20 }
 0x2ee   : > { %p2731_p1 = pnand %p4383_p9, %p4382_p7 }
 0x2f0   : > { %2952 = dma.done.wait (!%p2731_p1), %s2072_s8, 4096  }
 0x2f1   : > { %2954 = vsyncadd (!%p2731_p1), %s2072_s8, 4294963200  ;;  %s2081_s9 = scalar_lea.sflag [#allocation10], %s2071_s20 }
 0x2f2   : > { %2956 = dma.done.wait (!%p2731_p1), %s2081_s9, 32  }
 0x2f3   : > { %2958 = vsyncadd (!%p2731_p1), %s2081_s9, 4294967264  ;;  %p21_p12 = scmp.ge.s32.totalorder %s3061_s24, 4   ;;  %s4384_s12 = smov %s2965_s13 }
 0x2f4   : > { %s4385_s13 = smov %s2969_s14  ;;  %s4386_s14 = smov %s3095_s17 }
 0x2f5   : > { %s4387_s15 = smov %s3061_s24  ;;  %23 = sbr.rel (!%p21_p12) target bundleno = 8 (0x8), region = 97 }
 0x2fc   :  { %2086 = vsyncpa [#allocation4], 1 }
 0x2fd   :  { %2088 = vsyncpa [#allocation4 + $0x1], 1 }
 0x2fe   :  { %2089 = vsyncpa [#allocation7], 1 }
 0x2ff   :  { %2090 = vsyncpa [#allocation5], 1 }
 0x300   :  { %2092 = vsyncpa [#allocation5 + $0x1], 1 }
 0x301   :  { %2093 = vsyncpa [#allocation10], 1 }
 0x302   :  { %2095 = vsyncpa [#allocation10 + $0x1], 1 }

</bundles_post_ra>
